<compile_context>
chip_gen: v6e
topology: v6e:2x2x1
jax: 0.10.0
libtpu: 0.0.40
codegen_flags: <defaults>
</compile_context>

<pallas_src>
import functools

import jax
import jax.numpy as jnp
from jax.experimental import pallas as pl
from jax.experimental.pallas import tpu as pltpu


def _pick_tile(c: int) -> int:
    """Largest MXU-friendly channel tile that evenly divides the channel count."""
    for t in (256, 128):
        if c % t == 0:
            return t
    return c  # small / odd channel counts: full dim is still a legal block


def _conv_single_chunk_kernel(x_ref, w_ref, s_ref, o_ref, *,
                              n_taps, tap_offsets, m_rows, activation):
    """Fast path: whole Cin fits in one block -> no scratch accumulator.

    x_ref: (L, CIN)           flattened padded input (compute dtype)
    w_ref: (K*K, CIN, COUT_T) BN-folded weights
    s_ref: (1, COUT_T)        per-channel shift (BN beta-term or conv bias), f32
    o_ref: (M, COUT_T)        output rows (incl. junk W columns)
    """
    # Shift folded into the accumulator init; everything stays in registers.
    acc = jnp.broadcast_to(s_ref[...], (m_rows, o_ref.shape[-1]))
    for t in range(n_taps):
        off = tap_offsets[t]                          # static Python int
        x_tap = x_ref[pl.ds(off, m_rows), :]          # (M, CIN)
        acc = acc + jnp.dot(x_tap, w_ref[t],
                            preferred_element_type=jnp.float32)
    if activation is not None:
        acc = activation(acc)
    o_ref[...] = acc.astype(o_ref.dtype)


def _conv_multi_chunk_kernel(x_ref, w_ref, s_ref, o_ref, acc_ref, *,
                             n_taps, tap_offsets, m_rows, activation):
    """Cin-reduction path: accumulator resident in VMEM across the ci grid axis.

    acc_ref: (M, COUT_T) f32 VMEM scratch, carried across pl.program_id(2).
    """
    ci = pl.program_id(2)

    @pl.when(ci == 0)
    def _init():
        # Fold the per-channel shift into the accumulator init (frees the epilogue add).
        acc_ref[...] = jnp.broadcast_to(s_ref[...], acc_ref.shape)

    # Statically unrolled K*K tap loop: each tap is one MXU matmul over a
    # contiguous row window of the flattened padded input.
    acc = acc_ref[...]
    for t in range(n_taps):
        off = tap_offsets[t]
        x_tap = x_ref[pl.ds(off, m_rows), :]
        acc = acc + jnp.dot(x_tap, w_ref[t],
                            preferred_element_type=jnp.float32)

    is_last = ci == pl.num_programs(2) - 1

    @pl.when(jnp.logical_not(is_last))
    def _carry():
        acc_ref[...] = acc

    @pl.when(is_last)
    def _finalize():
        # Finalize straight from registers (no scratch read-back on the last step).
        y = activation(acc) if activation is not None else acc
        o_ref[...] = y.astype(o_ref.dtype)


def base_conv_forward(x_nchw, weight_oihw, *,
                      bias=None, bn_params=None, activation=None,
                      stride=1, padding=1, dilation=1, groups=1,
                      compute_dtype=jnp.bfloat16, out_dtype=None):
    """Forward pass of BaseConv: Conv2d (+ eval-mode BN) (+ activation).

    x_nchw:      (N, Cin, H, W)                         (PyTorch NCHW layout)
    weight_oihw: (Cout, Cin, K, K)                      (square kernel)
    bias:        (Cout,) or None                        (used when bn_params is None)
    bn_params:   (gamma, beta, running_mean, running_var, eps) or None
    activation:  None or a jnp-traceable elementwise callable
    """
    if stride != 1 or groups != 1:
        raise NotImplementedError(
            "TODO(synk): stride != 1 / groups != 1 not implemented in the Pallas kernel")

    N, Cin, H, W = x_nchw.shape
    Cout, Cin_w, KH, KW = weight_oihw.shape
    assert Cin_w == Cin and KH == KW, "square kernel, groups=1 only"
    K, P, dil = KH, padding, dilation
    out_dtype = out_dtype or x_nchw.dtype

    Hp, Wp = H + 2 * P, W + 2 * P
    H_out = Hp - dil * (K - 1)
    W_out = Wp - dil * (K - 1)
    assert H_out > 0 and W_out > 0

    # ---- host-side (XLA) layout plumbing ---------------------------------------
    # NCHW -> NHWC (cast early to halve pad traffic) -> zero-pad spatially ->
    # flatten (Hp, Wp) -> pad dil*(K-1) extra rows so the largest tap window stays
    # in bounds.
    extra = dil * (K - 1)
    L = Hp * Wp + extra
    x_nhwc = jnp.transpose(x_nchw, (0, 2, 3, 1)).astype(compute_dtype)
    x_pad = jnp.pad(x_nhwc, ((0, 0), (P, P), (P, P), (0, 0)))
    x_flat = jnp.pad(x_pad.reshape(N, Hp * Wp, Cin), ((0, 0), (0, extra), (0, 0)))

    # Weights: OIHW -> (K*K, Cin, Cout); fold the BN scale into the Cout columns so
    # only a per-channel shift remains (and that shift is folded into acc init).
    w_taps = jnp.transpose(weight_oihw, (2, 3, 1, 0)).reshape(K * K, Cin, Cout)
    w_taps = w_taps.astype(jnp.float32)
    if bn_params is not None:
        gamma, beta, mean, var, eps = bn_params
        scale = gamma.astype(jnp.float32) * jax.lax.rsqrt(var.astype(jnp.float32) + eps)
        shift = beta.astype(jnp.float32) - mean.astype(jnp.float32) * scale
        w_taps = w_taps * scale[None, None, :]
        # TODO(synk): training-mode BatchNorm2d (batch statistics) not implemented.
    else:
        shift = (bias if bias is not None
                 else jnp.zeros((Cout,), jnp.float32)).astype(jnp.float32)
    w_taps = w_taps.astype(compute_dtype)
    shift = shift.reshape(1, Cout)

    # ---- tiling ------------------------------------------------------------------
    CIN_T = _pick_tile(Cin)
    COUT_T = _pick_tile(Cout)
    n_ci = Cin // CIN_T
    n_co = Cout // COUT_T
    M = H_out * Wp  # output rows per image (includes Wp - W_out junk columns per row)
    tap_offsets = tuple(dy * dil * Wp + dx * dil for dy in range(K) for dx in range(K))

    cdt_size = jnp.dtype(compute_dtype).itemsize
    out_size = jnp.dtype(out_dtype).itemsize

    if n_ci == 1:
        # Fast path: no Cin reduction axis, no scratch accumulator; the input slab
        # is reused across Cout tiles without re-DMA.
        kernel = functools.partial(
            _conv_single_chunk_kernel,
            n_taps=K * K, tap_offsets=tap_offsets, m_rows=M, activation=activation)
        grid = (N, n_co)
        in_specs = [
            pl.BlockSpec((None, L, CIN_T), lambda n, co: (n, 0, 0)),
            pl.BlockSpec((K * K, CIN_T, COUT_T), lambda n, co: (0, 0, co)),
            pl.BlockSpec((1, COUT_T), lambda n, co: (0, co)),
        ]
        out_specs = pl.BlockSpec((None, M, COUT_T), lambda n, co: (n, 0, co))
        scratch_shapes = []
        dim_sems = ("parallel", "parallel")
    else:
        kernel = functools.partial(
            _conv_multi_chunk_kernel,
            n_taps=K * K, tap_offsets=tap_offsets, m_rows=M, activation=activation)
        grid = (N, n_co, n_ci)  # reduction (Cin) axis last
        in_specs = [
            pl.BlockSpec((None, L, CIN_T), lambda n, co, ci: (n, 0, ci)),
            pl.BlockSpec((K * K, CIN_T, COUT_T), lambda n, co, ci: (0, ci, co)),
            pl.BlockSpec((1, COUT_T), lambda n, co, ci: (0, co)),
        ]
        out_specs = pl.BlockSpec((None, M, COUT_T), lambda n, co, ci: (n, 0, co))
        scratch_shapes = [pltpu.VMEM((M, COUT_T), jnp.float32)]
        dim_sems = ("parallel", "parallel", "arbitrary")

    # Rough double-buffered working-set estimate; raise the scoped VMEM limit only
    # when the default would be too tight.
    est_bytes = (2 * L * CIN_T * cdt_size                     # x block, double-buffered
                 + 2 * K * K * CIN_T * COUT_T * cdt_size      # w block
                 + 2 * 8 * max(COUT_T, 128) * 4               # shift (tile-padded)
                 + 2 * M * COUT_T * out_size                  # output block
                 + (M * COUT_T * 4 if n_ci > 1 else 0))       # f32 accumulator
    cp_kwargs = dict(dimension_semantics=dim_sems)
    if est_bytes > (24 << 20):
        cp_kwargs["vmem_limit_bytes"] = min(int(est_bytes * 1.25) + (4 << 20), 128 << 20)

    grid_spec = pltpu.PrefetchScalarGridSpec(
        num_scalar_prefetch=0,
        grid=grid,
        in_specs=in_specs,
        out_specs=out_specs,
        scratch_shapes=scratch_shapes,
    )

    out_flat = pl.pallas_call(
        kernel,
        out_shape=jax.ShapeDtypeStruct((N, M, Cout), out_dtype),
        grid_spec=grid_spec,
        compiler_params=pltpu.CompilerParams(**cp_kwargs),
    )(x_flat, w_taps, shift)

    # Drop the junk W columns and return in PyTorch's NCHW layout.
    out = out_flat.reshape(N, H_out, Wp, Cout)[:, :, :W_out, :]
    return jnp.transpose(out, (0, 3, 1, 2))


def _reference_forward(x, w, bias, bn_params, activation, stride, padding, dilation):
    """Pure-JAX reference mirroring the PyTorch BaseConv forward (eval mode)."""
    y = jax.lax.conv_general_dilated(
        x.astype(jnp.float32), w.astype(jnp.float32),
        window_strides=(stride, stride),
        padding=[(padding, padding), (padding, padding)],
        rhs_dilation=(dilation, dilation),
        dimension_numbers=("NCHW", "OIHW", "NCHW"),
        precision=jax.lax.Precision.HIGHEST)
    if bn_params is not None:
        gamma, beta, mean, var, eps = bn_params
        inv = jax.lax.rsqrt(var + eps)
        y = ((y - mean[None, :, None, None]) * (inv * gamma)[None, :, None, None]
             + beta[None, :, None, None])
    elif bias is not None:
        y = y + bias[None, :, None, None]
    if activation is not None:
        y = activation(y)
    return y


if __name__ == "__main__":
    key = jax.random.PRNGKey(0)
    kx, kw, kb, kg, kbe, km, kv = jax.random.split(key, 7)

    N, Cin, Cout, H, W, K = 2, 4, 8, 16, 16, 3
    x = jax.random.normal(kx, (N, Cin, H, W), dtype=jnp.float32)
    w = jax.random.normal(kw, (Cout, Cin, K, K), dtype=jnp.float32) * 0.1
    bias = jax.random.normal(kb, (Cout,), dtype=jnp.float32) * 0.1
    gamma = 1.0 + 0.1 * jax.random.normal(kg, (Cout,), dtype=jnp.float32)
    beta = 0.1 * jax.random.normal(kbe, (Cout,), dtype=jnp.float32)
    running_mean = 0.1 * jax.random.normal(km, (Cout,), dtype=jnp.float32)
    running_var = jax.random.uniform(kv, (Cout,), dtype=jnp.float32,
                                     minval=0.5, maxval=1.5)
    bn_params = (gamma, beta, running_mean, running_var, 1e-5)
    relu = lambda v: jnp.maximum(v, 0.0)

    # Case 1: use_bn=True + ReLU (conv has no bias, BN folded into weights).
    out_bn = jax.block_until_ready(
        base_conv_forward(x, w, bn_params=bn_params, activation=relu))
    ref_bn = _reference_forward(x, w, None, bn_params, relu, 1, 1, 1)
    assert out_bn.shape == ref_bn.shape, (out_bn.shape, ref_bn.shape)
    assert jnp.allclose(out_bn, ref_bn, atol=5e-2, rtol=5e-2), \
        float(jnp.max(jnp.abs(out_bn - ref_bn)))

    # Case 2: use_bn=False (conv bias), no activation.
    out_b = jax.block_until_ready(base_conv_forward(x, w, bias=bias, activation=None))
    ref_b = _reference_forward(x, w, bias, None, None, 1, 1, 1)
    assert out_b.shape == ref_b.shape, (out_b.shape, ref_b.shape)
    assert jnp.allclose(out_b, ref_b, atol=5e-2, rtol=5e-2), \
        float(jnp.max(jnp.abs(out_b - ref_b)))

    print("KERNEL_OK")
</pallas_src>

<mosaic_0001>
module attributes {stable_mosaic.version = 11 : i64} {
  func.func @_conv_single_chunk_kernel(%arg0: i32, %arg1: i32, %arg2: memref<1x326x4xbf16, #tpu.memory_space<vmem>>, %arg3: memref<9x4x8xbf16, #tpu.memory_space<vmem>>, %arg4: memref<1x8xf32, #tpu.memory_space<vmem>>, %arg5: memref<1x288x8xf32, #tpu.memory_space<vmem>>) attributes {dimension_semantics = [#tpu.dimension_semantics<parallel>, #tpu.dimension_semantics<parallel>], iteration_bounds = array<i64: 2, 1>, scalar_prefetch = 0 : i64, scratch_operands = 0 : i64, tpu.core_type = #tpu.core_type<tc>, window_params = [{transform_indices = @transform_0, window_bounds = array<i64: 1, 326, 4>}, {transform_indices = @transform_1, window_bounds = array<i64: 9, 4, 8>}, {transform_indices = @transform_2, window_bounds = array<i64: 1, 8>}, {transform_indices = @transform_3, window_bounds = array<i64: 1, 288, 8>}]} {
    %c0 = arith.constant 0 : index
    %c0_0 = arith.constant 0 : index
    %0 = vector.load %arg4[%c0, %c0_0] : memref<1x8xf32, #tpu.memory_space<vmem>>, vector<1x8xf32>
    %1 = vector.shape_cast %0 : vector<1x8xf32> to vector<1x8xf32>
    %2 = vector.broadcast %1 : vector<1x8xf32> to vector<288x8xf32>
    %c0_1 = arith.constant 0 : index
    %c0_2 = arith.constant 0 : index
    %c0_3 = arith.constant 0 : index
    %3 = vector.load %arg2[%c0_1, %c0_2, %c0_3] : memref<1x326x4xbf16, #tpu.memory_space<vmem>>, vector<1x288x4xbf16>
    %4 = vector.shape_cast %3 : vector<1x288x4xbf16> to vector<288x4xbf16>
    %c0_4 = arith.constant 0 : index
    %c0_5 = arith.constant 0 : index
    %c0_6 = arith.constant 0 : index
    %5 = vector.load %arg3[%c0_4, %c0_5, %c0_6] : memref<9x4x8xbf16, #tpu.memory_space<vmem>>, vector<1x4x8xbf16>
    %6 = vector.shape_cast %5 : vector<1x4x8xbf16> to vector<4x8xbf16>
    %cst = arith.constant dense<0.000000e+00> : vector<288x8xf32>
    %7 = tpu.matmul %4, %6, %cst {dimension_numbers = #tpu.dot_dimension_numbers<[1], [0], [0], [1], [0, 0, 1, 1], [], []>} : vector<288x4xbf16>, vector<4x8xbf16>, vector<288x8xf32> -> vector<288x8xf32>
    %8 = arith.addf %2, %7 : vector<288x8xf32>
    %c0_7 = arith.constant 0 : index
    %c1 = arith.constant 1 : index
    %c0_8 = arith.constant 0 : index
    %9 = vector.load %arg2[%c0_7, %c1, %c0_8] : memref<1x326x4xbf16, #tpu.memory_space<vmem>>, vector<1x288x4xbf16>
    %10 = vector.shape_cast %9 : vector<1x288x4xbf16> to vector<288x4xbf16>
    %c1_9 = arith.constant 1 : index
    %c0_10 = arith.constant 0 : index
    %c0_11 = arith.constant 0 : index
    %11 = vector.load %arg3[%c1_9, %c0_10, %c0_11] : memref<9x4x8xbf16, #tpu.memory_space<vmem>>, vector<1x4x8xbf16>
    %12 = vector.shape_cast %11 : vector<1x4x8xbf16> to vector<4x8xbf16>
    %cst_12 = arith.constant dense<0.000000e+00> : vector<288x8xf32>
    %13 = tpu.matmul %10, %12, %cst_12 {dimension_numbers = #tpu.dot_dimension_numbers<[1], [0], [0], [1], [0, 0, 1, 1], [], []>} : vector<288x4xbf16>, vector<4x8xbf16>, vector<288x8xf32> -> vector<288x8xf32>
    %14 = arith.addf %8, %13 : vector<288x8xf32>
    %c0_13 = arith.constant 0 : index
    %c2 = arith.constant 2 : index
    %c0_14 = arith.constant 0 : index
    %15 = vector.load %arg2[%c0_13, %c2, %c0_14] : memref<1x326x4xbf16, #tpu.memory_space<vmem>>, vector<1x288x4xbf16>
    %16 = vector.shape_cast %15 : vector<1x288x4xbf16> to vector<288x4xbf16>
    %c2_15 = arith.constant 2 : index
    %c0_16 = arith.constant 0 : index
    %c0_17 = arith.constant 0 : index
    %17 = vector.load %arg3[%c2_15, %c0_16, %c0_17] : memref<9x4x8xbf16, #tpu.memory_space<vmem>>, vector<1x4x8xbf16>
    %18 = vector.shape_cast %17 : vector<1x4x8xbf16> to vector<4x8xbf16>
    %cst_18 = arith.constant dense<0.000000e+00> : vector<288x8xf32>
    %19 = tpu.matmul %16, %18, %cst_18 {dimension_numbers = #tpu.dot_dimension_numbers<[1], [0], [0], [1], [0, 0, 1, 1], [], []>} : vector<288x4xbf16>, vector<4x8xbf16>, vector<288x8xf32> -> vector<288x8xf32>
    %20 = arith.addf %14, %19 : vector<288x8xf32>
    %c0_19 = arith.constant 0 : index
    %c18 = arith.constant 18 : index
    %c0_20 = arith.constant 0 : index
    %21 = vector.load %arg2[%c0_19, %c18, %c0_20] : memref<1x326x4xbf16, #tpu.memory_space<vmem>>, vector<1x288x4xbf16>
    %22 = vector.shape_cast %21 : vector<1x288x4xbf16> to vector<288x4xbf16>
    %c3 = arith.constant 3 : index
    %c0_21 = arith.constant 0 : index
    %c0_22 = arith.constant 0 : index
    %23 = vector.load %arg3[%c3, %c0_21, %c0_22] : memref<9x4x8xbf16, #tpu.memory_space<vmem>>, vector<1x4x8xbf16>
    %24 = vector.shape_cast %23 : vector<1x4x8xbf16> to vector<4x8xbf16>
    %cst_23 = arith.constant dense<0.000000e+00> : vector<288x8xf32>
    %25 = tpu.matmul %22, %24, %cst_23 {dimension_numbers = #tpu.dot_dimension_numbers<[1], [0], [0], [1], [0, 0, 1, 1], [], []>} : vector<288x4xbf16>, vector<4x8xbf16>, vector<288x8xf32> -> vector<288x8xf32>
    %26 = arith.addf %20, %25 : vector<288x8xf32>
    %c0_24 = arith.constant 0 : index
    %c19 = arith.constant 19 : index
    %c0_25 = arith.constant 0 : index
    %27 = vector.load %arg2[%c0_24, %c19, %c0_25] : memref<1x326x4xbf16, #tpu.memory_space<vmem>>, vector<1x288x4xbf16>
    %28 = vector.shape_cast %27 : vector<1x288x4xbf16> to vector<288x4xbf16>
    %c4 = arith.constant 4 : index
    %c0_26 = arith.constant 0 : index
    %c0_27 = arith.constant 0 : index
    %29 = vector.load %arg3[%c4, %c0_26, %c0_27] : memref<9x4x8xbf16, #tpu.memory_space<vmem>>, vector<1x4x8xbf16>
    %30 = vector.shape_cast %29 : vector<1x4x8xbf16> to vector<4x8xbf16>
    %cst_28 = arith.constant dense<0.000000e+00> : vector<288x8xf32>
    %31 = tpu.matmul %28, %30, %cst_28 {dimension_numbers = #tpu.dot_dimension_numbers<[1], [0], [0], [1], [0, 0, 1, 1], [], []>} : vector<288x4xbf16>, vector<4x8xbf16>, vector<288x8xf32> -> vector<288x8xf32>
    %32 = arith.addf %26, %31 : vector<288x8xf32>
    %c0_29 = arith.constant 0 : index
    %c20 = arith.constant 20 : index
    %c0_30 = arith.constant 0 : index
    %33 = vector.load %arg2[%c0_29, %c20, %c0_30] : memref<1x326x4xbf16, #tpu.memory_space<vmem>>, vector<1x288x4xbf16>
    %34 = vector.shape_cast %33 : vector<1x288x4xbf16> to vector<288x4xbf16>
    %c5 = arith.constant 5 : index
    %c0_31 = arith.constant 0 : index
    %c0_32 = arith.constant 0 : index
    %35 = vector.load %arg3[%c5, %c0_31, %c0_32] : memref<9x4x8xbf16, #tpu.memory_space<vmem>>, vector<1x4x8xbf16>
    %36 = vector.shape_cast %35 : vector<1x4x8xbf16> to vector<4x8xbf16>
    %cst_33 = arith.constant dense<0.000000e+00> : vector<288x8xf32>
    %37 = tpu.matmul %34, %36, %cst_33 {dimension_numbers = #tpu.dot_dimension_numbers<[1], [0], [0], [1], [0, 0, 1, 1], [], []>} : vector<288x4xbf16>, vector<4x8xbf16>, vector<288x8xf32> -> vector<288x8xf32>
    %38 = arith.addf %32, %37 : vector<288x8xf32>
    %c0_34 = arith.constant 0 : index
    %c36 = arith.constant 36 : index
    %c0_35 = arith.constant 0 : index
    %39 = vector.load %arg2[%c0_34, %c36, %c0_35] : memref<1x326x4xbf16, #tpu.memory_space<vmem>>, vector<1x288x4xbf16>
    %40 = vector.shape_cast %39 : vector<1x288x4xbf16> to vector<288x4xbf16>
    %c6 = arith.constant 6 : index
    %c0_36 = arith.constant 0 : index
    %c0_37 = arith.constant 0 : index
    %41 = vector.load %arg3[%c6, %c0_36, %c0_37] : memref<9x4x8xbf16, #tpu.memory_space<vmem>>, vector<1x4x8xbf16>
    %42 = vector.shape_cast %41 : vector<1x4x8xbf16> to vector<4x8xbf16>
    %cst_38 = arith.constant dense<0.000000e+00> : vector<288x8xf32>
    %43 = tpu.matmul %40, %42, %cst_38 {dimension_numbers = #tpu.dot_dimension_numbers<[1], [0], [0], [1], [0, 0, 1, 1], [], []>} : vector<288x4xbf16>, vector<4x8xbf16>, vector<288x8xf32> -> vector<288x8xf32>
    %44 = arith.addf %38, %43 : vector<288x8xf32>
    %c0_39 = arith.constant 0 : index
    %c37 = arith.constant 37 : index
    %c0_40 = arith.constant 0 : index
    %45 = vector.load %arg2[%c0_39, %c37, %c0_40] : memref<1x326x4xbf16, #tpu.memory_space<vmem>>, vector<1x288x4xbf16>
    %46 = vector.shape_cast %45 : vector<1x288x4xbf16> to vector<288x4xbf16>
    %c7 = arith.constant 7 : index
    %c0_41 = arith.constant 0 : index
    %c0_42 = arith.constant 0 : index
    %47 = vector.load %arg3[%c7, %c0_41, %c0_42] : memref<9x4x8xbf16, #tpu.memory_space<vmem>>, vector<1x4x8xbf16>
    %48 = vector.shape_cast %47 : vector<1x4x8xbf16> to vector<4x8xbf16>
    %cst_43 = arith.constant dense<0.000000e+00> : vector<288x8xf32>
    %49 = tpu.matmul %46, %48, %cst_43 {dimension_numbers = #tpu.dot_dimension_numbers<[1], [0], [0], [1], [0, 0, 1, 1], [], []>} : vector<288x4xbf16>, vector<4x8xbf16>, vector<288x8xf32> -> vector<288x8xf32>
    %50 = arith.addf %44, %49 : vector<288x8xf32>
    %c0_44 = arith.constant 0 : index
    %c38 = arith.constant 38 : index
    %c0_45 = arith.constant 0 : index
    %51 = vector.load %arg2[%c0_44, %c38, %c0_45] : memref<1x326x4xbf16, #tpu.memory_space<vmem>>, vector<1x288x4xbf16>
    %52 = vector.shape_cast %51 : vector<1x288x4xbf16> to vector<288x4xbf16>
    %c8 = arith.constant 8 : index
    %c0_46 = arith.constant 0 : index
    %c0_47 = arith.constant 0 : index
    %53 = vector.load %arg3[%c8, %c0_46, %c0_47] : memref<9x4x8xbf16, #tpu.memory_space<vmem>>, vector<1x4x8xbf16>
    %54 = vector.shape_cast %53 : vector<1x4x8xbf16> to vector<4x8xbf16>
    %cst_48 = arith.constant dense<0.000000e+00> : vector<288x8xf32>
    %55 = tpu.matmul %52, %54, %cst_48 {dimension_numbers = #tpu.dot_dimension_numbers<[1], [0], [0], [1], [0, 0, 1, 1], [], []>} : vector<288x4xbf16>, vector<4x8xbf16>, vector<288x8xf32> -> vector<288x8xf32>
    %56 = arith.addf %50, %55 : vector<288x8xf32>
    %cst_49 = arith.constant 0.000000e+00 : f32
    %57 = vector.broadcast %cst_49 : f32 to vector<288x8xf32>
    %58 = arith.maximumf %56, %57 : vector<288x8xf32>
    %c0_50 = arith.constant 0 : index
    %c0_51 = arith.constant 0 : index
    %c0_52 = arith.constant 0 : index
    %59 = vector.load %arg5[%c0_50, %c0_51, %c0_52] : memref<1x288x8xf32, #tpu.memory_space<vmem>>, vector<1x288x8xf32>
    %60 = vector.shape_cast %59 : vector<1x288x8xf32> to vector<288x8xf32>
    %61 = vector.shape_cast %58 : vector<288x8xf32> to vector<1x288x8xf32>
    tpu.vector_store %arg5[%c0_50, %c0_51, %c0_52], %61 {strides = array<i32>} : memref<1x288x8xf32, #tpu.memory_space<vmem>>, vector<1x288x8xf32>,
    return
  }
  func.func @transform_0(%arg0: i32, %arg1: i32) -> (i32, i32, i32) {
    %c0_i32 = arith.constant 0 : i32
    %c0_i32_0 = arith.constant 0 : i32
    %c0_i32_1 = arith.constant 0 : i32
    return %arg0, %c0_i32, %c0_i32_0 : i32, i32, i32
  }
  func.func @transform_1(%arg0: i32, %arg1: i32) -> (i32, i32, i32) {
    %c0_i32 = arith.constant 0 : i32
    %c0_i32_0 = arith.constant 0 : i32
    %c0_i32_1 = arith.constant 0 : i32
    return %c0_i32, %c0_i32_0, %arg1 : i32, i32, i32
  }
  func.func @transform_2(%arg0: i32, %arg1: i32) -> (i32, i32) {
    %c0_i32 = arith.constant 0 : i32
    %c0_i32_0 = arith.constant 0 : i32
    return %c0_i32, %arg1 : i32, i32
  }
  func.func @transform_3(%arg0: i32, %arg1: i32) -> (i32, i32, i32) {
    %c0_i32 = arith.constant 0 : i32
    %c0_i32_0 = arith.constant 0 : i32
    return %arg0, %c0_i32, %arg1 : i32, i32, i32
  }
}

</mosaic_0001>

<bundles_post_ra>
// kernel: tpu_custom_call.1
= control target key start
LH: loop header
LB: loop body
LE: loop exit
PB: predicated region body
PF: predicated region fallthrough
CT: control target
= control target key end

     0   :  { %s5009_s12 = smov 0   ;;  %s5011_s13 = smov 0   ;;  %s6423_s0 = inlined_call_operand.vmem [shape: bf16[2,326,4], index: 0, kind: input, shape index: {}]   ;;  %s6424_s1 = inlined_call_operand.vmem [shape: bf16[9,4,8], index: 1, kind: input, shape index: {}]   ;;  %s6425_s2 = inlined_call_operand.vmem [shape: f32[1,8], index: 2, kind: input, shape index: {}]   ;;  %s6426_s3 = inlined_call_operand.vmem [shape: f32[2,288,8], index: 3, kind: output, shape index: {}]  }
   0x1   :  { %s5013_s14 = smov 0  }
   0x2 LB: > { %s25_s15 = sadd.s32 1, %s4983_s13  ;;  %p4078_p0 = scmp.ge.s32.totalorder %s4987_s14, 1  ;;  %s4987_s14 = sphi %s5013_s14, %s13_s14   ;;  %s4983_s13 = sphi %s5011_s13, %s6482_s13   ;;  %s4979_s12 = sphi %s5009_s12, %s6481_s12  }
   0x3   : > { %p27_p1 = scmp.ge.s32.totalorder %s25_s15, 2  ;;  %p168_p2 = scmp.lt.s32.totalorder %s4987_s14, 3 }
   0x5   : > { %s6484_s15 = smov (%p27_p1, %s25_s15), 0  ;;  %p169_p3 = pnand %p4078_p0, %p168_p2 }
   0x7   : > { %172 = sbr.rel (%p169_p3) target bundleno = 544 (0x220), region = 32 }
   0xc   : > { %v266_v0 = vld [vmem:[%s6424_s1] sm:$0x3]  ;;  %vm412_vm0 = vcmask 1041408   ;;  %p202_p4 = scmp.lt.s32.totalorder %s4979_s12, 1  ;;  %v4156_v2 = vld [vmem:[%s6424_s1 + $0x4] sm:$0x3] }
   0xd   : > { %4849 = vmatprep.subr.msk.bf16.mxu0 %vm412_vm0, %v266_v0  ;;  %4850 = vmatprep.subr.msk.bf16.mxu1 %vm412_vm0, %v266_v0  ;;  %v414_v1 = vsel %vm412_vm0, %v266_v0, 0  ;;  %v4118_v3 = vld [vmem:[%s6424_s1 + $0x2] sm:$0x3]  ;;  %vm357_vm1 = vcmask 31744   ;;  %v1279_v7 = vsel %vm412_vm0, %v4156_v2, 0  ;;  %vm1186_vm3 = vcmask 1046528  }
   0xe   : > { %4506 = vmatpush3.bf16.msra.mxu0 %v414_v1  ;;  %4848 = vmatpush3.bf16.msra.mxu1 %v414_v1  ;;  %s6486_s12 = smov (!%p202_p4, %s4979_s12), 1  ;;  %v5057_v8 = vld [vmem:[%s6424_s1 + $0x6] sm:$0x3]  ;;  %v965_v10 = vsel %vm412_vm0, %v4118_v3, 0  ;;  %v5065_v11 = vld [vmem:[%s6424_s1 + $0x8] sm:$0x3] }
   0xf   : > { %4852 = vmatprep.subr.msk.bf16.mxu0 %vm412_vm0, %v4156_v2  ;;  %4851 = vmatprep.subr.msk.bf16.mxu1 %vm412_vm0, %v4118_v3  ;;  %s4859_s22 = smul.u32 164, %s6486_s12  ;;  %vm761_vm2 = vsmask.f32 7424  ;;  %v1718_v55 = vsel %vm412_vm0, %v5057_v8, 0  ;;  %v5131_v62 = vld [vmem:[%s6424_s1 + $0xa] sm:$0x3] }
  0x10   : > { %vm2386_vm4 = vcmask 1045504   ;;  %vm1939_vm5 = vsmask.f32 6400  ;;  %vm3586_vm6 = vcmask 1044480   ;;  %vm3139_vm7 = vsmask.f32 5376 }
  0x11   : > { %s5047_s25 = scalar_lea.vmem %s6423_s0, %s4859_s22  ;;  %s4860_s17 = smul.u32 288, %s6486_s12  ;;  %vm3930_vm8 = vcmask 64512  }
  0x12   : > { %v4885_v4 = vld [vmem:[%s5047_s25] sm:$0xff]   ;;  %v4886_v5 = vld [vmem:[%s5047_s25 + $0x50] sm:$0xff]   ;;  %v4887_v6 = vld [vmem:[%s5047_s25 + $0x8] sm:$0xff]  }
  0x13   : > { %4507 = vmatprep.mubr.msk.bf16.mxu0 %vm357_vm1, %v4885_v4  ;;  %4527 = vmatprep.mubr.msk.bf16.mxu1 %vm357_vm1, %v4886_v5  ;;  %v4888_v9 = vld [vmem:[%s5047_s25 + $0x58] sm:$0xff]   ;;  %v4889_v12 = vld [vmem:[%s5047_s25 + $0x10] sm:$0xff]   ;;  %v4890_v13 = vld [vmem:[%s5047_s25 + $0x60] sm:$0xff]   ;;  %s6306_s20 = scalar_lea.vmem %s6426_s3, %s4860_s17 }
  0x14   : > { %4508 = vmatmul.mubr.msk.bf16.vlgmr.msra.gmra.mxu0 %vm357_vm1, %v4887_v6  ;;  %4528 = vmatmul.mubr.msk.bf16.vlgmr.msra.gmra.mxu1 %vm357_vm1, %v4888_v9  ;;  %v4891_v14 = vld [vmem:[%s5047_s25 + $0x18] sm:$0xff]   ;;  %v4892_v15 = vld [vmem:[%s5047_s25 + $0x68] sm:$0xff]   ;;  %v4893_v16 = vld [vmem:[%s5047_s25 + $0x20] sm:$0xff]   ;;  %v2165_v9 = vsel %vm412_vm0, %v5065_v11, 0 }
  0x15   : > { %4582 = vmatpush3.bf16.msra.mxu0 %v1279_v7  ;;  %4544 = vmatpush3.bf16.msra.mxu1 %v965_v10  ;;  %v4894_v17 = vld [vmem:[%s5047_s25 + $0x70] sm:$0xff]   ;;  %v4895_v18 = vld [vmem:[%s5047_s25 + $0x28] sm:$0xff]   ;;  %v4896_v19 = vld [vmem:[%s5047_s25 + $0x78] sm:$0xff]  }
  0x16   : > { %4511 = vmatprep.mubr.msk.bf16.mxu0 %vm357_vm1, %v4889_v12  ;;  %4531 = vmatprep.mubr.msk.bf16.mxu1 %vm357_vm1, %v4890_v13  ;;  %v4897_v20 = vld [vmem:[%s5047_s25 + $0x30] sm:$0xff]   ;;  %v4898_v21 = vld [vmem:[%s5047_s25 + $0x80] sm:$0xff]   ;;  %v5092_v25 = vld [vmem:[%s5047_s25 + $0x8] sm:$0xff]  }
  0x17   : > { %4853 = vmatprep.subr.msk.bf16.mxu1 %vm412_vm0, %v5057_v8  ;;  %4854 = vmatprep.subr.msk.bf16.mxu0 %vm412_vm0, %v5065_v11  ;;  %v629_v22 = vld [vmem:[%s5047_s25] sm:$0xf]  ;;  %v630_v23 = vld [vmem:[%s5047_s25 + $0x4] sm:$0xf]  ;;  %v770_v28 = vshll.u32 %v5092_v25, 16  ;;  %v4905_v29 = vld [vmem:[%s5047_s25 + $0x10] sm:$0xff]  }
  0x18   : > { %v4119_v24 = vcombine.low %v629_v22, %v630_v23  ;;  %v5101_v32 = vld [vmem:[%s5047_s25 + $0x18] sm:$0xff]   ;;  %v1180_v33 = vld [vmem:[%s5047_s25] sm:$0xe]  ;;  %v4900_v36 = vld [vmem:[%s5047_s25 + $0x88] sm:$0xff]   ;;  %v778_v38 = vshll.u32 %v4905_v29, 16  ;;  %v774_v39 = vshrl.u32 %v5092_v25, 16 }
  0x19   : > { %v772_v31 = vrot.slane %v770_v28, 1  ;;  %v4899_v34 = vld [vmem:[%s5047_s25 + $0x38] sm:$0xff]   ;;  %v4901_v37 = vld [vmem:[%s5047_s25 + $0x40] sm:$0xff]   ;;  %v4157_v40 = vcombine.low %v1180_v33, %v630_v23  ;;  %v782_v42 = vshrl.u32 %v4905_v29, 16  ;;  %v786_v43 = vshll.u32 %v5101_v32, 16  ;;  %v5117_v51 = vld [vmem:[%s5047_s25 + $0x28] sm:$0xff]  }
  0x1a   : > { %v763_v26 = vshrl.u32 %v4119_v24, 16  ;;  %v765_v27 = vshll.u32 %v4119_v24, 16  ;;  %v780_v44 = vrot.slane %v778_v38, 1  ;;  %v4908_v45 = vld [vmem:[%s5047_s25 + $0x20] sm:$0xff]   ;;  %v1188_v48 = vrot.slane %v5092_v25, 1  ;;  %v4904_v52 = vld [vmem:[%s5047_s25 + $0x48] sm:$0xff]  }
  0x1b   : > { %v776_v46 = vor.u32 %v774_v39, %v772_v31  ;;  %v1187_v47 = vrot.slane %v4157_v40, 1  ;;  %v788_v50 = vrot.slane %v786_v43, 1  ;;  %v794_v53 = vshll.u32 %v4908_v45, 16  ;;  %v4910_v0 = vld [vmem:[%s5047_s25 + $0x30] sm:$0xff]   ;;  %v5139_v5 = vld [vmem:[%s5047_s25 + $0x38] sm:$0xff]   ;;  %v5163_v23 = vld [vmem:[%s5047_s25 + $0x48] sm:$0xff]  }
  0x1c   : > { %4512 = vmatmul.mubr.msk.bf16.gmra.mxu0 %vm357_vm1, %v4891_v14  ;;  %4532 = vmatmul.mubr.msk.bf16.gmra.mxu1 %vm357_vm1, %v4892_v15  ;;  %v767_v30 = vrot.slane %v765_v27, 1  ;;  %v784_v49 = vor.u32 %v782_v42, %v780_v44  ;;  %v790_v57 = vshrl.u32 %v5101_v32, 16  ;;  %v798_v59 = vshrl.u32 %v4908_v45, 16  ;;  %v5180_v39 = vld [vmem:[%s5047_s25 + $0x58] sm:$0xff]  }
  0x1d   : > { %4515 = vmatprep.mubr.msk.bf16.mxu0 %vm357_vm1, %v4893_v16  ;;  %4535 = vmatprep.mubr.msk.bf16.mxu1 %vm357_vm1, %v4894_v17  ;;  %v781_v54 = vsel %vm761_vm2, %v776_v46, %v780_v44  ;;  %v1189_v56 = vsel %vm1186_vm3, %v1187_v47, %v1188_v48  ;;  %v802_v60 = vshll.u32 %v5117_v51, 16  ;;  %v1190_v61 = vrot.slane %v4905_v29, 1  ;;  %v4912_v16 = vld [vmem:[%s5047_s25 + $0x40] sm:$0xff]   ;;  %v5156_v17 = vld [vmem:[%s6424_s1 + $0xc] sm:$0x3] }
  0x1e   : > { %v768_v35 = vor.u32 %v767_v30, %v763_v26  ;;  %v789_v58 = vsel %vm761_vm2, %v784_v49, %v788_v50  ;;  %v796_v63 = vrot.slane %v794_v53, 1  ;;  %v792_v1 = vor.u32 %v790_v57, %v788_v50  ;;  %v4916_v50 = vld [vmem:[%s5047_s25 + $0x60] sm:$0xff]  }
  0x1f   : > { %v804_v3 = vrot.slane %v802_v60, 1  ;;  %v1192_v4 = vrot.slane %v5101_v32, 1  ;;  %v1191_v6 = vsel %vm1186_vm3, %v1188_v48, %v1190_v61  ;;  %v810_v7 = vshll.u32 %v4910_v0, 16  ;;  %v4914_v32 = vld [vmem:[%s5047_s25 + $0x50] sm:$0xff]  }
  0x20   : > { %v773_v41 = vsel %vm761_vm2, %v768_v35, %v772_v31  ;;  %v800_v2 = vor.u32 %v798_v59, %v796_v63  ;;  %v797_v8 = vsel %vm761_vm2, %v792_v1, %v796_v63  ;;  %v806_v10 = vshrl.u32 %v5117_v51, 16 }
  0x21   : > { %v1193_v13 = vsel %vm1186_vm3, %v1190_v61, %v1192_v4  ;;  %v814_v14 = vshrl.u32 %v4910_v0, 16  ;;  %v818_v15 = vshll.u32 %v5139_v5, 16  ;;  %v812_v11 = vrot.slane %v810_v7, 1 }
  0x22   : > { %v805_v12 = vsel %vm761_vm2, %v800_v2, %v804_v3  ;;  %v826_v25 = vshll.u32 %v4912_v16, 16  ;;  %v822_v28 = vshrl.u32 %v5139_v5, 16  ;;  %v830_v30 = vshrl.u32 %v4912_v16, 16 }
  0x23   : > { %v820_v22 = vrot.slane %v818_v15, 1  ;;  %v834_v31 = vshll.u32 %v5163_v23, 16  ;;  %v838_v44 = vshrl.u32 %v5163_v23, 16  ;;  %v846_v46 = vshrl.u32 %v4914_v32, 16 }
  0x24   : > { %4516 = vmatmul.mubr.msk.bf16.gmra.mxu0 %vm357_vm1, %v4895_v18  ;;  %4536 = vmatmul.mubr.msk.bf16.gmra.mxu1 %vm357_vm1, %v4896_v19  ;;  %v1194_v18 = vrot.slane %v4908_v45, 1  ;;  %v808_v19 = vor.u32 %v806_v10, %v804_v3  ;;  %v828_v33 = vrot.slane %v826_v25, 1  ;;  %v850_v47 = vshll.u32 %v5180_v39, 16  ;;  %v4918_v3 = vld [vmem:[%s5047_s25 + $0x70] sm:$0xff]   ;;  %v5227_v25 = vld [vmem:[%s5047_s25 + $0x88] sm:$0xff]  }
  0x25   : > { %4519 = vmatprep.mubr.msk.bf16.mxu0 %vm357_vm1, %v4897_v20  ;;  %4539 = vmatprep.mubr.msk.bf16.mxu1 %vm357_vm1, %v4898_v21  ;;  %v1196_v20 = vrot.slane %v5117_v51, 1  ;;  %v816_v21 = vor.u32 %v814_v14, %v812_v11  ;;  %v824_v35 = vor.u32 %v822_v28, %v820_v22  ;;  %v836_v38 = vrot.slane %v834_v31, 1  ;;  %v5235_v31 = vld [vmem:[%s5047_s25 + $0x90] ss:$0 sps:$4 sm:$0x11]  }
  0x26   : > { %v1195_v24 = vsel %vm1186_vm3, %v1192_v4, %v1194_v18  ;;  %v813_v26 = vsel %vm761_vm2, %v808_v19, %v812_v11  ;;  %v1202_v49 = vrot.slane %v4912_v16, 1  ;;  %v858_v57 = vshll.u32 %v4916_v50, 16 }
  0x27   : > { %v1197_v27 = vsel %vm1186_vm3, %v1194_v18, %v1196_v20  ;;  %v821_v29 = vsel %vm761_vm2, %v816_v21, %v820_v22  ;;  %v829_v42 = vsel %vm761_vm2, %v824_v35, %v828_v33  ;;  %v840_v51 = vor.u32 %v838_v44, %v836_v38  ;;  %v5249_v44 = vld [vmem:[%s5047_s25 + $0x10] sm:$0xff]  }
  0x28   : > { %v854_v60 = vshrl.u32 %v5180_v39, 16  ;;  %v862_v63 = vshrl.u32 %v4916_v50, 16  ;;  %v860_v1 = vrot.slane %v858_v57, 1  ;;  %v1206_v2 = vrot.slane %v4914_v32, 1 }
  0x29   : > { %v874_v10 = vshll.u32 %v4918_v3, 16  ;;  %v878_v16 = vshrl.u32 %v4918_v3, 16  ;;  %v1210_v19 = vrot.slane %v4916_v50, 1  ;;  %v5256_v50 = vld [vmem:[%s5047_s25 + $0x18] sm:$0xff]  }
  0x2b   : > { %v876_v18 = vrot.slane %v874_v10, 1  ;;  %v5293_v10 = vld [vmem:[%s5047_s25 + $0x40] sm:$0xff]  }
  0x2c   : > { %4520 = vmatmul.mubr.msk.bf16.gmra.mxu0 %vm357_vm1, %v4899_v34  ;;  %4540 = vmatmul.mubr.msk.bf16.gmra.mxu1 %vm357_vm1, %v4900_v36  ;;  %v1198_v34 = vrot.slane %v4910_v0, 1  ;;  %v1200_v36 = vrot.slane %v5139_v5, 1  ;;  %v1208_v5 = vrot.slane %v5180_v39, 1  ;;  %v1495_v39 = vld [vmem:[%s5047_s25 + $0xc] sm:$0xf] }
  0x2d   : > { %4523 = vmatprep.mubr.msk.bf16.mxu0 %vm357_vm1, %v4901_v37  ;;  %4545 = vmatprep.mubr.msk.bf16.mxu1 %vm357_vm1, %v773_v41  ;;  %v832_v37 = vor.u32 %v830_v30, %v828_v33  ;;  %v842_v41 = vshll.u32 %v4914_v32, 16 }
  0x2e   : > { %v1199_v40 = vsel %vm1186_vm3, %v1196_v20, %v1198_v34  ;;  %v1201_v43 = vsel %vm1186_vm3, %v1198_v34, %v1200_v36  ;;  %v5222_v20 = vld [vmem:[%s5047_s25 + $0x80] sm:$0xff]   ;;  %v898_v34 = vshll.u32 %v5227_v25, 16 }
  0x2f   : > { %v837_v45 = vsel %vm761_vm2, %v832_v37, %v836_v38  ;;  %v844_v48 = vrot.slane %v842_v41, 1  ;;  %v890_v28 = vshll.u32 %v5222_v20, 16  ;;  %v894_v33 = vshrl.u32 %v5222_v20, 16  ;;  %v1494_v38 = vld [vmem:[%s5047_s25 + $0x8] sm:$0xe] }
  0x30   : > { %v1214_v37 = vrot.slane %v4918_v3, 1 }
  0x31   : > { %v848_v53 = vor.u32 %v846_v46, %v844_v48  ;;  %v906_v46 = vshll.u32 %v5235_v31, 16 }
  0x34   : > { %4524 = vmatmul.mubr.msk.bf16.gmra.mxu0 %vm357_vm1, %v4904_v52  ;;  %4546 = vmatmul.mubr.msk.bf16.vlgmr.msra.gmra.mxu1 %vm357_vm1, %v781_v54  ;;  %v1204_v52 = vrot.slane %v5163_v23, 1  ;;  %v852_v54 = vrot.slane %v850_v47, 1  ;;  %v880_v23 = vor.u32 %v878_v16, %v876_v18  ;;  %v5301_v16 = vld [vmem:[%s5047_s25 + $0x50] sm:$0xff]  }
  0x35   : > { %4583 = vmatprep.mubr.msk.bf16.mxu0 %vm357_vm1, %v1189_v56  ;;  %4620 = vmatpush3.bf16.msra.mxu1 %v1718_v55  ;;  %v5195_v55 = vld [vmem:[%s5047_s25 + $0x68] sm:$0xff]   ;;  %v1203_v56 = vsel %vm1186_vm3, %v1200_v36, %v1202_v49  ;;  %v892_v36 = vrot.slane %v890_v28, 1 }
  0x36   : > { %4549 = vmatprep.mubr.msk.bf16.mxu1 %vm357_vm1, %v789_v58  ;;  %4855 = vmatprep.subr.msk.bf16.mxu1 %vm412_vm0, %v5131_v62  ;;  %v845_v58 = vsel %vm761_vm2, %v840_v51, %v844_v48  ;;  %v1205_v59 = vsel %vm1186_vm3, %v1202_v49, %v1204_v52  ;;  %v853_v61 = vsel %vm761_vm2, %v848_v53, %v852_v54  ;;  %v866_v0 = vshll.u32 %v5195_v55, 16  ;;  %v5259_v51 = vld [vmem:[%s5047_s25 + $0x20] sm:$0xff]  }
  0x37   : > { %v856_v4 = vor.u32 %v854_v60, %v852_v54  ;;  %v870_v14 = vshrl.u32 %v5195_v55, 16  ;;  %v1212_v22 = vrot.slane %v5195_v55, 1  ;;  %v1218_v54 = vrot.slane %v5222_v20, 1  ;;  %v5270_v60 = vld [vmem:[%s5047_s25 + $0x30] sm:$0xff]  }
  0x38   : > { %v868_v7 = vrot.slane %v866_v0, 1  ;;  %v4177_v55 = vcombine.low %v1494_v38, %v1495_v39  ;;  %v2392_v0 = vrot.slane %v5259_v51, 2  ;;  %v2404_v38 = vrot.slane %v5301_v16, 2 }
  0x39   : > { %v1213_v30 = vsel %vm1186_vm3, %v1210_v19, %v1212_v22  ;;  %v1215_v49 = vsel %vm1186_vm3, %v1212_v22, %v1214_v37  ;;  %v5311_v22 = vld [vmem:[%s5047_s25 + $0x58] sm:$0xff]  }
  0x3a   : > { %v872_v21 = vor.u32 %v870_v14, %v868_v7  ;;  %v1941_v3 = vshrl.u32 %v4177_v55, 16  ;;  %v1627_v14 = vrot.slane %v5249_v44, 1 }
  0x3c   : > { %4584 = vmatmul.mubr.msk.bf16.vlgmr.msra.gmra.mxu0 %vm357_vm1, %v1191_v6  ;;  %4550 = vmatmul.mubr.msk.bf16.gmra.mxu1 %vm357_vm1, %v797_v8  ;;  %v864_v6 = vor.u32 %v862_v63, %v860_v1  ;;  %v5210_v8 = vld [vmem:[%s5047_s25 + $0x78] sm:$0xff]   ;;  %v2390_v63 = vrot.slane %v5256_v50, 2 }
  0x3d   : > { %4658 = vmatpush3.bf16.msra.mxu0 %v2165_v9  ;;  %4553 = vmatprep.mubr.msk.bf16.mxu1 %vm357_vm1, %v805_v12  ;;  %v1207_v9 = vsel %vm1186_vm3, %v1204_v52, %v1206_v2  ;;  %v861_v12 = vsel %vm761_vm2, %v856_v4, %v860_v1  ;;  %v882_v11 = vshll.u32 %v5210_v8, 16  ;;  %v1216_v41 = vrot.slane %v5210_v8, 1 }
  0x3e   : > { %4587 = vmatprep.mubr.msk.bf16.mxu0 %vm357_vm1, %v1193_v13  ;;  %4856 = vmatprep.subr.msk.bf16.mxu0 %vm412_vm0, %v5156_v17  ;;  %v1209_v13 = vsel %vm1186_vm3, %v1206_v2, %v1208_v5  ;;  %v869_v15 = vsel %vm761_vm2, %v864_v6, %v868_v7  ;;  %v2388_v52 = vrot.slane %v5249_v44, 2  ;;  %v908_v2 = vrot.slane %v906_v46, 1 }
  0x3f   : > { %v1217_v53 = vsel %vm1186_vm3, %v1214_v37, %v1216_v41  ;;  %v1949_v6 = vshrl.u32 %v5249_v44, 16  ;;  %v1219_v20 = vsel %vm1186_vm3, %v1216_v41, %v1218_v54  ;;  %v5328_v37 = vld [vmem:[%s5047_s25 + $0x60] sm:$0xff]  }
  0x40   : > { %v5285_v7 = vsel %vm2386_vm4, %v2388_v52, %v2390_v63 }
  0x44   : > { %4588 = vmatmul.mubr.msk.bf16.gmra.mxu0 %vm357_vm1, %v1195_v24  ;;  %4554 = vmatmul.mubr.msk.bf16.gmra.mxu1 %vm357_vm1, %v813_v26  ;;  %v884_v24 = vrot.slane %v882_v11, 1  ;;  %v1211_v26 = vsel %vm1186_vm3, %v1208_v5, %v1210_v19  ;;  %v1944_v5 = vshll.u32 %v4177_v55, 16  ;;  %v2396_v11 = vrot.slane %v5270_v60, 2 }
  0x45   : > { %4591 = vmatprep.mubr.msk.bf16.mxu0 %vm357_vm1, %v1197_v27  ;;  %4557 = vmatprep.mubr.msk.bf16.mxu1 %vm357_vm1, %v821_v29  ;;  %v886_v27 = vshrl.u32 %v5210_v8, 16  ;;  %v877_v29 = vsel %vm761_vm2, %v872_v21, %v876_v18  ;;  %v5288_v8 = vsel %vm2386_vm4, %v2390_v63, %v2392_v0  ;;  %v5369_v63 = vld [vmem:[%s5047_s25 + $0x80] sm:$0xff]  }
  0x46   : > { %v885_v32 = vsel %vm761_vm2, %v880_v23, %v884_v24 }
  0x47   : > { %v888_v35 = vor.u32 %v886_v27, %v884_v24  ;;  %v1943_v24 = vrot.slane %v1941_v3, 1 }
  0x49   : > { %v893_v48 = vsel %vm761_vm2, %v888_v35, %v892_v36  ;;  %v1222_v35 = vrot.slane %v5235_v31, 1 }
  0x4c   : > { %4592 = vmatmul.mubr.msk.bf16.gmra.mxu0 %vm357_vm1, %v1199_v40  ;;  %4558 = vmatmul.mubr.msk.bf16.gmra.mxu1 %vm357_vm1, %v829_v42  ;;  %v2380_v40 = vld [vmem:[%s5047_s25 + $0x8] sm:$0xc]  ;;  %v896_v42 = vor.u32 %v894_v33, %v892_v36  ;;  %v1629_v36 = vrot.slane %v5256_v50, 1 }
  0x4d   : > { %4595 = vmatprep.mubr.msk.bf16.mxu0 %vm357_vm1, %v1201_v43  ;;  %4561 = vmatprep.mubr.msk.bf16.mxu1 %vm357_vm1, %v837_v45  ;;  %v900_v43 = vrot.slane %v898_v34, 1  ;;  %v902_v45 = vshrl.u32 %v5227_v25, 16  ;;  %v4235_v47 = vcombine.low %v2380_v40, %v1495_v39  ;;  %v5333_v39 = vld [vmem:[%s5047_s25 + $0x68] sm:$0xff]  }
  0x4f   : > { %v2387_v57 = vrot.slane %v4235_v47, 2  ;;  %v904_v1 = vor.u32 %v902_v45, %v900_v43  ;;  %v5347_v45 = vld [vmem:[%s5047_s25 + $0x70] sm:$0xff]  }
  0x51   : > { %v5279_v4 = vsel %vm2386_vm4, %v2387_v57, %v2388_v52  ;;  %v909_v19 = vsel %vm761_vm2, %v904_v1, %v908_v2  ;;  %v2408_v52 = vrot.slane %v5328_v37, 2  ;;  %v2412_v57 = vrot.slane %v5347_v45, 2 }
  0x54   : > { %4596 = vmatmul.mubr.msk.bf16.gmra.mxu0 %vm357_vm1, %v1203_v56  ;;  %4562 = vmatmul.mubr.msk.bf16.gmra.mxu1 %vm357_vm1, %v845_v58  ;;  %v5265_v56 = vld [vmem:[%s5047_s25 + $0x28] sm:$0xff]   ;;  %v901_v58 = vsel %vm761_vm2, %v896_v42, %v900_v43  ;;  %v2406_v42 = vrot.slane %v5311_v22, 2  ;;  %v1958_v43 = vshrl.u32 %v5256_v50, 16 }
  0x55   : > { %4599 = vmatprep.mubr.msk.bf16.mxu0 %vm357_vm1, %v1205_v59  ;;  %4565 = vmatprep.mubr.msk.bf16.mxu1 %vm357_vm1, %v853_v61  ;;  %v1220_v59 = vrot.slane %v5227_v25, 1  ;;  %v5273_v61 = vld [vmem:[%s5047_s25 + $0x38] sm:$0xff]  }
  0x56   : > { %v2398_v18 = vrot.slane %v5273_v61, 2  ;;  %v5375_v1 = vsel %vm2386_vm4, %v2406_v42, %v2408_v52 }
  0x57   : > { %v1221_v21 = vsel %vm1186_vm3, %v1218_v54, %v1220_v59  ;;  %v1631_v54 = vrot.slane %v5259_v51, 1 }
  0x58   : > { %v5320_v28 = vsel %vm2386_vm4, %v2396_v11, %v2398_v18 }
  0x5c   : > { %4600 = vmatmul.mubr.msk.bf16.gmra.mxu0 %vm357_vm1, %v1207_v9  ;;  %4566 = vmatmul.mubr.msk.bf16.gmra.mxu1 %vm357_vm1, %v861_v12  ;;  %v1952_v9 = vshll.u32 %v5249_v44, 16  ;;  %v2394_v12 = vrot.slane %v5265_v56, 2  ;;  %v1961_v44 = vshll.u32 %v5256_v50, 16  ;;  %v1967_v50 = vshrl.u32 %v5259_v51, 16 }
  0x5d   : > { %4603 = vmatprep.mubr.msk.bf16.mxu0 %vm357_vm1, %v1209_v13  ;;  %4569 = vmatprep.mubr.msk.bf16.mxu1 %vm357_vm1, %v869_v15  ;;  %v1626_v13 = vrot.slane %v4177_v55, 1  ;;  %v5298_v15 = vld [vmem:[%s5047_s25 + $0x48] sm:$0xff]   ;;  %v1970_v55 = vshll.u32 %v5259_v51, 16  ;;  %v1630_v51 = vsel %vm1186_vm3, %v1627_v14, %v1629_v36 }
  0x5e   : > { %v5314_v23 = vsel %vm2386_vm4, %v2392_v0, %v2394_v12  ;;  %v5317_v27 = vsel %vm2386_vm4, %v2394_v12, %v2396_v11  ;;  %v2402_v33 = vrot.slane %v5298_v15, 2  ;;  %v5372_v0 = vld [vmem:[%s5047_s25 + $0x88] sm:$0xff]   ;;  %v2416_v12 = vrot.slane %v5369_v63, 2 }
  0x5f   : > { %v1628_v34 = vsel %vm1186_vm3, %v1626_v13, %v1627_v14  ;;  %v2418_v13 = vrot.slane %v5372_v0, 2  ;;  %v2479_v11 = vsel %vm412_vm0, %v5131_v62, 0  ;;  %v1969_v14 = vrot.slane %v1967_v50, 1 }
  0x60   : > { %v5350_v46 = vsel %vm2386_vm4, %v2402_v33, %v2404_v38 }
  0x64   : > { %4604 = vmatmul.mubr.msk.bf16.gmra.mxu0 %vm357_vm1, %v1211_v26  ;;  %4570 = vmatmul.mubr.msk.bf16.gmra.mxu1 %vm357_vm1, %v877_v29  ;;  %v1946_v26 = vrot.slane %v1944_v5, 2  ;;  %v1951_v29 = vrot.slane %v1949_v6, 1  ;;  %v1960_v5 = vrot.slane %v1958_v43, 1  ;;  %v1963_v6 = vrot.slane %v1961_v44, 2 }
  0x65   : > { %4607 = vmatprep.mubr.msk.bf16.mxu0 %vm357_vm1, %v1213_v30  ;;  %4573 = vmatprep.mubr.msk.bf16.mxu1 %vm357_vm1, %v885_v32  ;;  %v1954_v30 = vrot.slane %v1952_v9, 2  ;;  %v2400_v32 = vrot.slane %v5293_v10, 2 }
  0x66   : > { %v1947_v31 = vor.u32 %v1946_v26, %v1943_v24  ;;  %v5404_v24 = vsel %vm2386_vm4, %v2416_v12, %v2418_v13  ;;  %v1964_v62 = vor.u32 %v1963_v6, %v1960_v5  ;;  %v1976_v26 = vshrl.u32 %v5265_v56, 16 }
  0x67   : > { %v5336_v40 = vsel %vm2386_vm4, %v2398_v18, %v2400_v32  ;;  %v5339_v41 = vsel %vm2386_vm4, %v2400_v32, %v2402_v33  ;;  %v1955_v47 = vor.u32 %v1954_v30, %v1951_v29  ;;  %v1632_v18 = vsel %vm1186_vm3, %v1629_v36, %v1631_v54  ;;  %v5416_v36 = vld [vmem:[%s5047_s25 + $0x90] sm:$0xff]  }
  0x68   : > { %v1979_v29 = vshll.u32 %v5265_v56, 16  ;;  %v1633_v30 = vrot.slane %v5265_v56, 1  ;;  %v1985_v32 = vshrl.u32 %v5270_v60, 16  ;;  %v1988_v33 = vshll.u32 %v5270_v60, 16 }
  0x69   : > { %v1978_v56 = vrot.slane %v1976_v26, 1  ;;  %v2420_v44 = vrot.slane %v5416_v36, 2  ;;  %v2003_v5 = vshrl.u32 %v5293_v10, 16  ;;  %v2006_v6 = vshll.u32 %v5293_v10, 16 }
  0x6a   : > { %v1981_v43 = vrot.slane %v1979_v29, 2 }
  0x6c   : > { %4608 = vmatmul.mubr.msk.bf16.gmra.mxu0 %vm357_vm1, %v1215_v49  ;;  %4574 = vmatmul.mubr.msk.bf16.gmra.mxu1 %vm357_vm1, %v893_v48  ;;  %v5354_v48 = vld [vmem:[%s5047_s25 + $0x78] sm:$0xff]   ;;  %v5357_v49 = vsel %vm2386_vm4, %v2404_v38, %v2406_v42  ;;  %v2918_v38 = vsel %vm412_vm0, %v5156_v17, 0  ;;  %v5432_v17 = vsel %vm2386_vm4, %v2418_v13, %v2420_v44  ;;  %v1639_v13 = vrot.slane %v5293_v10, 1 }
  0x6d   : > { %4611 = vmatprep.mubr.msk.bf16.mxu0 %vm357_vm1, %v1217_v53  ;;  %4577 = vmatprep.mubr.msk.bf16.mxu1 %vm357_vm1, %v901_v58  ;;  %v2410_v53 = vrot.slane %v5333_v39, 2  ;;  %v1223_v58 = vsel %vm1186_vm3, %v1220_v59, %v1222_v35  ;;  %v2414_v3 = vrot.slane %v5354_v48, 2  ;;  %v1956_v59 = vsel %vm1939_vm5, %v1947_v31, %v1955_v47  ;;  %v5423_v42 = vld [vmem:[%s5047_s25 + $0x98] ss:$0 sps:$4 sm:$0x33]  }
  0x6e   : > { %v1965_v31 = vsel %vm1939_vm5, %v1955_v47, %v1964_v62  ;;  %v2422_v50 = vrot.slane %v5423_v42, 2  ;;  %v1994_v47 = vshrl.u32 %v5273_v61, 16  ;;  %v1641_v10 = vrot.slane %v5298_v15, 1 }
  0x6f   : > { %v5378_v2 = vsel %vm2386_vm4, %v2408_v52, %v2410_v53  ;;  %v5383_v25 = vsel %vm2386_vm4, %v2410_v53, %v2412_v57  ;;  %v5387_v9 = vsel %vm2386_vm4, %v2412_v57, %v2414_v3  ;;  %v1634_v52 = vsel %vm1186_vm3, %v1631_v54, %v1633_v30  ;;  %v5440_v54 = vld [vmem:[%s6424_s1 + $0x10] sm:$0x3] }
  0x70   : > { %v1990_v53 = vrot.slane %v1988_v33, 2 }
  0x74   : > { %4612 = vmatmul.mubr.msk.bf16.gmra.mxu0 %vm357_vm1, %v1219_v20  ;;  %4578 = vmatmul.mubr.msk.bf16.gmra.mxu1 %vm357_vm1, %v909_v19  ;;  %v1972_v19 = vrot.slane %v1970_v55, 2  ;;  %v5398_v20 = vld [vmem:[%s6424_s1 + $0xe] sm:$0x3] }
  0x75   : > { %4615 = vmatprep.mubr.msk.bf16.mxu0 %vm357_vm1, %v1221_v21  ;;  %4621 = vmatprep.mubr.msk.bf16.mxu1 %vm357_vm1, %v1628_v34  ;;  %v5401_v21 = vsel %vm2386_vm4, %v2414_v3, %v2416_v12  ;;  %v1635_v34 = vrot.slane %v5270_v60, 1  ;;  %v1987_v60 = vrot.slane %v1985_v32, 1  ;;  %v5443_v3 = vsel %vm2386_vm4, %v2420_v44, %v2422_v50  ;;  %v5473_v44 = vld [vmem:[%s5047_s25 + $0x18] sm:$0xff]   ;;  %v5479_v50 = vld [vmem:[%s5047_s25 + $0x20] sm:$0xff]  }
  0x76   : > { %v1973_v35 = vor.u32 %v1972_v19, %v1969_v14  ;;  %v2005_v19 = vrot.slane %v2003_v5, 1  ;;  %v2012_v32 = vshrl.u32 %v5298_v15, 16 }
  0x77   : > { %v1636_v55 = vsel %vm1186_vm3, %v1633_v30, %v1635_v34  ;;  %v1991_v12 = vor.u32 %v1990_v53, %v1987_v60  ;;  %v1642_v60 = vsel %vm1186_vm3, %v1639_v13, %v1641_v10 }
  0x78   : > { %v1974_v57 = vsel %vm1939_vm5, %v1964_v62, %v1973_v35  ;;  %v2008_v62 = vrot.slane %v2006_v6, 2 }
  0x7a   : > { %v2009_v33 = vor.u32 %v2008_v62, %v2005_v19  ;;  %v2039_v62 = vshrl.u32 %v5328_v37, 16 }
  0x7c   : > { %4616 = vmatmul.mubr.msk.bf16.gmra.mxu0 %vm357_vm1, %v1223_v58  ;;  %4622 = vmatmul.mubr.msk.bf16.vlgmr.msra.gmra.mxu1 %vm357_vm1, %v1630_v51  ;;  %v1997_v58 = vshll.u32 %v5273_v61, 16  ;;  %v1982_v51 = vor.u32 %v1981_v43, %v1978_v56  ;;  %v3580_v56 = vld [vmem:[%s5047_s25 + $0x10] sm:$0x8]  ;;  %v1643_v43 = vrot.slane %v5301_v16, 1 }
  0x7d   : > { %4659 = vmatprep.mubr.msk.bf16.mxu0 %vm357_vm1, %v1956_v59  ;;  %4696 = vmatpush3.bf16.msra.mxu1 %v2479_v11  ;;  %v1637_v59 = vrot.slane %v5273_v61, 1  ;;  %v1996_v11 = vrot.slane %v1994_v47, 1 }
  0x7e   : > { %4625 = vmatprep.mubr.msk.bf16.mxu1 %vm357_vm1, %v1632_v18  ;;  %4857 = vmatprep.subr.msk.bf16.mxu1 %vm412_vm0, %v5398_v20  ;;  %v1999_v18 = vrot.slane %v1997_v58, 2  ;;  %v1983_v14 = vsel %vm1939_vm5, %v1973_v35, %v1982_v51  ;;  %v1992_v29 = vsel %vm1939_vm5, %v1982_v51, %v1991_v12  ;;  %v2021_v35 = vshrl.u32 %v5301_v16, 16 }
  0x7f   : > { %v1638_v26 = vsel %vm1186_vm3, %v1635_v34, %v1637_v59  ;;  %v1640_v61 = vsel %vm1186_vm3, %v1637_v59, %v1639_v13  ;;  %v2015_v34 = vshll.u32 %v5298_v15, 16  ;;  %v2014_v15 = vrot.slane %v2012_v32, 1 }
  0x80   : > { %v2000_v30 = vor.u32 %v1999_v18, %v1996_v11  ;;  %v3588_v58 = vrot.slane %v5473_v44, 3  ;;  %v2023_v51 = vrot.slane %v2021_v35, 1  ;;  %v1644_v6 = vsel %vm1186_vm3, %v1641_v10, %v1643_v43 }
  0x81   : > { %v2030_v18 = vshrl.u32 %v5311_v22, 16 }
  0x82   : > { %v2001_v53 = vsel %vm1939_vm5, %v1991_v12, %v2000_v30  ;;  %v1645_v12 = vrot.slane %v5311_v22, 1 }
  0x84   : > { %4660 = vmatmul.mubr.msk.bf16.vlgmr.msra.gmra.mxu0 %vm357_vm1, %v1965_v31  ;;  %4626 = vmatmul.mubr.msk.bf16.gmra.mxu1 %vm357_vm1, %v1634_v52  ;;  %v5468_v31 = vld [vmem:[%s5047_s25 + $0x14] sm:$0xf]  ;;  %v1646_v10 = vsel %vm1186_vm3, %v1643_v43, %v1645_v12 }
  0x85   : > { %4734 = vmatpush3.bf16.msra.mxu0 %v2918_v38  ;;  %4629 = vmatprep.mubr.msk.bf16.mxu1 %vm357_vm1, %v1636_v55  ;;  %v2024_v38 = vshll.u32 %v5301_v16, 16  ;;  %v4313_v52 = vcombine.low %v3580_v56, %v5468_v31  ;;  %v2010_v55 = vsel %vm1939_vm5, %v2000_v30, %v2009_v33  ;;  %v3590_v16 = vrot.slane %v5479_v50, 3  ;;  %v5506_v30 = vld [vmem:[%s5047_s25 + $0x30] sm:$0xff]  }
  0x86   : > { %4663 = vmatprep.mubr.msk.bf16.mxu0 %vm357_vm1, %v1974_v57  ;;  %4858 = vmatprep.subr.msk.bf16.mxu0 %vm412_vm0, %v5440_v54  ;;  %v2017_v57 = vrot.slane %v2015_v34, 2  ;;  %v2032_v34 = vrot.slane %v2030_v18, 1  ;;  %v2041_v56 = vrot.slane %v2039_v62, 1 }
  0x87   : > { %v3587_v47 = vrot.slane %v4313_v52, 3  ;;  %v2026_v5 = vrot.slane %v2024_v38, 2  ;;  %v5491_v13 = vsel %vm3586_vm6, %v3588_v58, %v3590_v16 }
  0x88   : > { %v2018_v11 = vor.u32 %v2017_v57, %v2014_v15  ;;  %v2051_v57 = vshll.u32 %v5333_v39, 16 }
  0x89   : > { %v5486_v59 = vsel %vm3586_vm6, %v3587_v47, %v3588_v58  ;;  %v2027_v19 = vor.u32 %v2026_v5, %v2023_v51  ;;  %v2057_v58 = vshrl.u32 %v5347_v45, 16  ;;  %v2060_v51 = vshll.u32 %v5347_v45, 16 }
  0x8a   : > { %v2019_v32 = vsel %vm1939_vm5, %v2009_v33, %v2018_v11  ;;  %v1649_v33 = vrot.slane %v5333_v39, 1  ;;  %v1651_v5 = vrot.slane %v5347_v45, 1 }
  0x8b   : > { %v2028_v38 = vsel %vm1939_vm5, %v2018_v11, %v2027_v19 }
  0x8c   : > { %4664 = vmatmul.mubr.msk.bf16.gmra.mxu0 %vm357_vm1, %v1983_v14  ;;  %4630 = vmatmul.mubr.msk.bf16.gmra.mxu1 %vm357_vm1, %v1638_v26  ;;  %v2033_v14 = vshll.u32 %v5311_v22, 16  ;;  %v2042_v26 = vshll.u32 %v5328_v37, 16  ;;  %v1652_v45 = vsel %vm1186_vm3, %v1649_v33, %v1651_v5 }
  0x8d   : > { %4667 = vmatprep.mubr.msk.bf16.mxu0 %vm357_vm1, %v1992_v29  ;;  %4633 = vmatprep.mubr.msk.bf16.mxu1 %vm357_vm1, %v1640_v61  ;;  %v1647_v29 = vrot.slane %v5328_v37, 1  ;;  %v5502_v61 = vld [vmem:[%s5047_s25 + $0x28] sm:$0xff]  }
  0x8e   : > { %v2035_v35 = vrot.slane %v2033_v14, 2  ;;  %v3592_v22 = vrot.slane %v5502_v61, 3  ;;  %v2044_v52 = vrot.slane %v2042_v26, 2  ;;  %v2053_v14 = vrot.slane %v2051_v57, 2 }
  0x8f   : > { %v1648_v37 = vsel %vm1186_vm3, %v1645_v12, %v1647_v29  ;;  %v5534_v12 = vld [vmem:[%s5047_s25 + $0x40] sm:$0xff]   ;;  %v2059_v26 = vrot.slane %v2057_v58, 1 }
  0x90   : > { %v2036_v15 = vor.u32 %v2035_v35, %v2032_v34  ;;  %v2045_v47 = vor.u32 %v2044_v52, %v2041_v56  ;;  %v2075_v52 = vshrl.u32 %v5369_v63, 16 }
  0x92   : > { %v2037_v11 = vsel %vm1939_vm5, %v2027_v19, %v2036_v15  ;;  %v2046_v62 = vsel %vm1939_vm5, %v2036_v15, %v2045_v47  ;;  %v1653_v19 = vrot.slane %v5354_v48, 1 }
  0x94   : > { %4668 = vmatmul.mubr.msk.bf16.gmra.mxu0 %vm357_vm1, %v2001_v53  ;;  %4634 = vmatmul.mubr.msk.bf16.gmra.mxu1 %vm357_vm1, %v1642_v60  ;;  %v3594_v60 = vrot.slane %v5506_v30, 3  ;;  %v5514_v53 = vsel %vm3586_vm6, %v3590_v16, %v3592_v22  ;;  %v5530_v16 = vld [vmem:[%s5047_s25 + $0x38] sm:$0xff]   ;;  %v1654_v15 = vsel %vm1186_vm3, %v1651_v5, %v1653_v19 }
  0x95   : > { %4671 = vmatprep.mubr.msk.bf16.mxu0 %vm357_vm1, %v2010_v55  ;;  %4637 = vmatprep.mubr.msk.bf16.mxu1 %vm357_vm1, %v1644_v6  ;;  %v2048_v55 = vshrl.u32 %v5333_v39, 16  ;;  %v1650_v6 = vsel %vm1186_vm3, %v1647_v29, %v1649_v33  ;;  %v3596_v39 = vrot.slane %v5530_v16, 3  ;;  %v5558_v33 = vld [vmem:[%s5047_s25 + $0x48] sm:$0xff]  }
  0x96   : > { %v5519_v43 = vsel %vm3586_vm6, %v3592_v22, %v3594_v60  ;;  %v2066_v22 = vshrl.u32 %v5354_v48, 16 }
  0x97   : > { %v2050_v18 = vrot.slane %v2048_v55, 1  ;;  %v5542_v34 = vsel %vm3586_vm6, %v3594_v60, %v3596_v39  ;;  %v2078_v60 = vshll.u32 %v5369_v63, 16  ;;  %v5562_v55 = vld [vmem:[%s5047_s25 + $0x50] sm:$0xff]  }
  0x98   : > { %v2068_v58 = vrot.slane %v2066_v22, 1  ;;  %v5586_v22 = vld [vmem:[%s5047_s25 + $0x58] sm:$0xff]  }
  0x99   : > { %v2054_v35 = vor.u32 %v2053_v14, %v2050_v18  ;;  %v2080_v18 = vrot.slane %v2078_v60, 2  ;;  %v3602_v14 = vrot.slane %v5562_v55, 3 }
  0x9b   : > { %v2055_v57 = vsel %vm1939_vm5, %v2045_v47, %v2054_v35  ;;  %v1657_v47 = vrot.slane %v5372_v0, 1 }
  0x9c   : > { %4672 = vmatmul.mubr.msk.bf16.gmra.mxu0 %vm357_vm1, %v2019_v32  ;;  %4638 = vmatmul.mubr.msk.bf16.gmra.mxu1 %vm357_vm1, %v1646_v10  ;;  %v2062_v10 = vrot.slane %v2060_v51, 2  ;;  %v3598_v32 = vrot.slane %v5534_v12, 3 }
  0x9d   : > { %4675 = vmatprep.mubr.msk.bf16.mxu0 %vm357_vm1, %v2028_v38  ;;  %4641 = vmatprep.mubr.msk.bf16.mxu1 %vm357_vm1, %v1648_v37  ;;  %v2069_v38 = vshll.u32 %v5354_v48, 16  ;;  %v1655_v37 = vrot.slane %v5369_v63, 1  ;;  %v3600_v48 = vrot.slane %v5558_v33, 3 }
  0x9e   : > { %v5547_v29 = vsel %vm3586_vm6, %v3596_v39, %v3598_v32  ;;  %v2063_v56 = vor.u32 %v2062_v10, %v2059_v26  ;;  %v2084_v26 = vshrl.u32 %v5372_v0, 16  ;;  %v2087_v10 = vshll.u32 %v5372_v0, 16 }
  0x9f   : > { %6436 = vst [vmem:[#allocation2_spill] sm:$0xff] %v5547_v29  ;;  %v2071_v51 = vrot.slane %v2069_v38, 2  ;;  %v1656_v63 = vsel %vm1186_vm3, %v1653_v19, %v1655_v37  ;;  %v5570_v39 = vsel %vm3586_vm6, %v3598_v32, %v3600_v48  ;;  %v5575_v5 = vsel %vm3586_vm6, %v3600_v48, %v3602_v14 }
  0xa0   : > { %6437 = vst [vmem:[#allocation3_spill] sm:$0xff] %v5570_v39  ;;  %6438 = vst [vmem:[#allocation4_spill] sm:$0xff] %v5575_v5  ;;  %v2096_v19 = vshll.u32 %v5416_v36, 16  ;;  %v1658_v38 = vsel %vm1186_vm3, %v1655_v37, %v1657_v47  ;;  %v3604_v0 = vrot.slane %v5586_v22, 3 }
  0xa2   : > { %v5599_v37 = vsel %vm3586_vm6, %v3602_v14, %v3604_v0 }
  0xa3   : > { %6439 = vst [vmem:[#allocation5_spill] sm:$0xff] %v5599_v37 }
  0xa4   : > { %4676 = vmatmul.mubr.msk.bf16.gmra.mxu0 %vm357_vm1, %v2037_v11  ;;  %4642 = vmatmul.mubr.msk.bf16.gmra.mxu1 %vm357_vm1, %v1650_v6  ;;  %v2064_v6 = vsel %vm1939_vm5, %v2054_v35, %v2063_v56  ;;  %v2077_v11 = vrot.slane %v2075_v52, 1  ;;  %v1659_v35 = vrot.slane %v5416_v36, 1  ;;  %v5590_v52 = vld [vmem:[%s5047_s25 + $0x60] sm:$0xff]  }
  0xa5   : > { %4679 = vmatprep.mubr.msk.bf16.mxu0 %vm357_vm1, %v2046_v62  ;;  %4645 = vmatprep.mubr.msk.bf16.mxu1 %vm357_vm1, %v1652_v45  ;;  %v2072_v62 = vor.u32 %v2071_v51, %v2068_v58  ;;  %v2093_v45 = vshrl.u32 %v5416_v36, 16  ;;  %v4941_v51 = vld [vmem:[%s5047_s25 + $0x98] ss:$0 sps:$4 sm:$0x11]   ;;  %v6427_v36 = vrot.slane %v5590_v52, 3 }
  0xa6   : > { %v2081_v32 = vor.u32 %v2080_v18, %v2077_v11  ;;  %v1660_v11 = vsel %vm1186_vm3, %v1657_v47, %v1659_v35  ;;  %v1661_v14 = vrot.slane %v4941_v51, 1 }
  0xa7   : > { %v2073_v60 = vsel %vm1939_vm5, %v2063_v56, %v2072_v62  ;;  %v2095_v48 = vrot.slane %v2093_v45, 1  ;;  %v5605_v56 = vsel %vm3586_vm6, %v3604_v0, %v6427_v36 }
  0xa8   : > { %v2082_v58 = vsel %vm1939_vm5, %v2072_v62, %v2081_v32  ;;  %6440 = vst [vmem:[#allocation6_spill] sm:$0xff] %v5605_v56  ;;  %v2105_v62 = vshll.u32 %v5423_v42, 16 }
  0xac   : > { %4680 = vmatmul.mubr.msk.bf16.gmra.mxu0 %vm357_vm1, %v2055_v57  ;;  %4646 = vmatmul.mubr.msk.bf16.gmra.mxu1 %vm357_vm1, %v1654_v15  ;;  %v2086_v15 = vrot.slane %v2084_v26, 1  ;;  %v2089_v57 = vrot.slane %v2087_v10, 2  ;;  %v2694_v26 = vld [vmem:[%s5047_s25 + $0x10] sm:$0xc] }
  0xad   : > { %4683 = vmatprep.mubr.msk.bf16.mxu0 %vm357_vm1, %v2064_v6  ;;  %4649 = vmatprep.mubr.msk.bf16.mxu1 %vm357_vm1, %v1656_v63  ;;  %v2098_v6 = vrot.slane %v2096_v19, 2  ;;  %v2102_v63 = vshrl.u32 %v5423_v42, 16  ;;  %v2107_v19 = vrot.slane %v2105_v62, 2  ;;  %v5617_v0 = vcombine.low %v2694_v26, %v5468_v31 }
  0xae   : > { %v2090_v18 = vor.u32 %v2089_v57, %v2086_v15  ;;  %v2827_v15 = vrot.slane %v5473_v44, 2  ;;  %v3365_v31 = vsel %vm412_vm0, %v5398_v20, 0  ;;  %v3679_v20 = vsel %vm412_vm0, %v5440_v54, 0 }
  0xaf   : > { %v2099_v47 = vor.u32 %v2098_v6, %v2095_v48  ;;  %v2104_v45 = vrot.slane %v2102_v63, 1  ;;  %v2839_v63 = vrot.slane %v5558_v33, 2 }
  0xb0   : > { %v2091_v10 = vsel %vm1939_vm5, %v2081_v32, %v2090_v18  ;;  %v2826_v32 = vrot.slane %v5617_v0, 2 }
  0xb1   : > { %v2108_v42 = vor.u32 %v2107_v19, %v2104_v45 }
  0xb2   : > { %v2828_v57 = vsel %vm2386_vm4, %v2826_v32, %v2827_v15 }
  0xb4   : > { %4684 = vmatmul.mubr.msk.bf16.gmra.mxu0 %vm357_vm1, %v2073_v60  ;;  %4650 = vmatmul.mubr.msk.bf16.gmra.mxu1 %vm357_vm1, %v1658_v38  ;;  %v1662_v60 = vsel %vm1186_vm3, %v1659_v35, %v1661_v14  ;;  %v2100_v38 = vsel %vm1939_vm5, %v2090_v18, %v2099_v47  ;;  %v2109_v35 = vsel %vm1939_vm5, %v2099_v47, %v2108_v42  ;;  %v2843_v42 = vrot.slane %v5586_v22, 2 }
  0xb5   : > { %4687 = vmatprep.mubr.msk.bf16.mxu0 %vm357_vm1, %v2082_v58  ;;  %4653 = vmatprep.mubr.msk.bf16.mxu1 %vm357_vm1, %v1660_v11  ;;  %v2831_v58 = vrot.slane %v5502_v61, 2 }
  0xbc   : > { %4688 = vmatmul.mubr.msk.bf16.gmra.mxu0 %vm357_vm1, %v2091_v10  ;;  %4654 = vmatmul.mubr.msk.bf16.gmra.mxu1 %vm357_vm1, %v1662_v60  ;;  %v2841_v60 = vrot.slane %v5562_v55, 2 }
  0xbd   : > { %4691 = vmatprep.mubr.msk.bf16.mxu0 %vm357_vm1, %v2100_v38  ;;  %4697 = vmatprep.mubr.msk.bf16.mxu1 %vm357_vm1, %v5279_v4  ;;  %v2829_v4 = vrot.slane %v5479_v50, 2 }
  0xbf   : > { %v2830_v51 = vsel %vm2386_vm4, %v2827_v15, %v2829_v4  ;;  %v2832_v48 = vsel %vm2386_vm4, %v2829_v4, %v2831_v58  ;;  %v5703_v4 = vld [vmem:[%s5047_s25 + $0x68] sm:$0xff]  }
  0xc4   : > { %4692 = vmatmul.mubr.msk.bf16.gmra.mxu0 %vm357_vm1, %v2109_v35  ;;  %4698 = vmatmul.mubr.msk.bf16.vlgmr.msra.gmra.mxu1 %vm357_vm1, %v5285_v7  ;;  %v2833_v7 = vrot.slane %v5506_v30, 2 }
  0xc5   : > { %4735 = vmatprep.mubr.msk.bf16.mxu0 %vm357_vm1, %v2828_v57  ;;  %4772 = vmatpush3.bf16.msra.mxu1 %v3365_v31  ;;  %v2842_v57 = vsel %vm2386_vm4, %v2839_v63, %v2841_v60  ;;  %v2844_v31 = vsel %vm2386_vm4, %v2841_v60, %v2843_v42 }
  0xc6   : > { %4701 = vmatprep.mubr.msk.bf16.mxu1 %vm357_vm1, %v5288_v8  ;;  %v2835_v8 = vrot.slane %v5530_v16, 2  ;;  %v2834_v6 = vsel %vm2386_vm4, %v2831_v58, %v2833_v7 }
  0xc8   : > { %v2836_v54 = vsel %vm2386_vm4, %v2833_v7, %v2835_v8  ;;  %v2847_v7 = vrot.slane %v5703_v4, 2 }
  0xcc   : > { %4736 = vmatmul.mubr.msk.bf16.vlgmr.msra.gmra.mxu0 %vm357_vm1, %v2830_v51  ;;  %4702 = vmatmul.mubr.msk.bf16.gmra.mxu1 %vm357_vm1, %v5314_v23  ;;  %v2837_v23 = vrot.slane %v5534_v12, 2 }
  0xcd   : > { %4810 = vmatpush3.bf16.msra.mxu0 %v3679_v20  ;;  %4705 = vmatprep.mubr.msk.bf16.mxu1 %vm357_vm1, %v5317_v27  ;;  %v2845_v20 = vrot.slane %v5590_v52, 2 }
  0xce   : > { %4739 = vmatprep.mubr.msk.bf16.mxu0 %vm357_vm1, %v2832_v48  ;;  %v2838_v26 = vsel %vm2386_vm4, %v2835_v8, %v2837_v23  ;;  %v2840_v10 = vsel %vm2386_vm4, %v2837_v23, %v2839_v63 }
  0xcf   : > { %v2846_v23 = vsel %vm2386_vm4, %v2843_v42, %v2845_v20  ;;  %v5745_v42 = vld [vmem:[%s6425_s2] ss:$0 sm:$0xff] }
  0xd4   : > { %v5652_v11 = vpop.f32.mrf.mxu0  ;;  %4740 = vmatmul.mubr.msk.bf16.gmra.mxu0 %vm357_vm1, %v2834_v6  ;;  %v5655_v18 = vpop.f32.mrf.mxu1  ;;  %4706 = vmatmul.mubr.msk.bf16.gmra.mxu1 %vm357_vm1, %v5320_v28 }
  0xd5   : > { %4743 = vmatprep.mubr.msk.bf16.mxu0 %vm357_vm1, %v2836_v54  ;;  %4709 = vmatprep.mubr.msk.bf16.mxu1 %vm357_vm1, %v5336_v40 }
  0xd6   : > { %v5661_v27 = vpop.f32.mrf.mxu0  ;;  %v5666_v62 = vpop.f32.mrf.mxu1 }
  0xd8   : > { %v5668_v14 = vpop.f32.mrf.mxu0  ;;  %v5670_v47 = vpop.f32.mrf.mxu1 }
  0xda   : > { %v5673_v28 = vpop.f32.mrf.mxu0  ;;  %v5676_v45 = vpop.f32.mrf.mxu1 }
  0xdb   : > { %6441 = vst [vmem:[#allocation7_spill] sm:$0xff] %v5676_v45 }
  0xdc   : > { %v5678_v19 = vpop.f32.mrf.mxu0  ;;  %4744 = vmatmul.mubr.msk.bf16.gmra.mxu0 %vm357_vm1, %v2838_v26  ;;  %v5681_v40 = vpop.f32.mrf.mxu1  ;;  %4710 = vmatmul.mubr.msk.bf16.gmra.mxu1 %vm357_vm1, %v5339_v41  ;;  %v2848_v26 = vsel %vm2386_vm4, %v2845_v20, %v2847_v7 }
  0xdd   : > { %6442 = vst [vmem:[#allocation8_spill] sm:$0xff] %v5681_v40  ;;  %4747 = vmatprep.mubr.msk.bf16.mxu0 %vm357_vm1, %v2840_v10  ;;  %4713 = vmatprep.mubr.msk.bf16.mxu1 %vm357_vm1, %v5350_v46  ;;  %v5735_v10 = vld [vmem:[%s5047_s25 + $0x78] sm:$0xff]  }
  0xde   : > { %v5687_v38 = vpop.f32.mrf.mxu0  ;;  %v5692_v32 = vpop.f32.mrf.mxu1  ;;  %6450 = vst [vmem:[#allocation16_spill] sm:$0xff] %v5735_v10 }
  0xdf   : > { %6443 = vst [vmem:[#allocation9_spill] sm:$0xff] %v5692_v32 }
  0xe0   : > { %v5694_v15 = vpop.f32.mrf.mxu0  ;;  %v5696_v35 = vpop.f32.mrf.mxu1 }
  0xe1   : > { %6444 = vst [vmem:[#allocation10_spill] sm:$0xff] %v5696_v35  ;;  %v5807_v35 = vld [vmem:[%s5047_s25 + $0x90] sm:$0xff]  }
  0xe2   : > { %v5699_v41 = vpop.f32.mrf.mxu0  ;;  %v5705_v58 = vpop.f32.mrf.mxu1 }
  0xe3   : > { %6445 = vst [vmem:[#allocation11_spill] sm:$0xff] %v5705_v58 }
  0xe4   : > { %v5707_v46 = vpop.f32.mrf.mxu0  ;;  %4748 = vmatmul.mubr.msk.bf16.gmra.mxu0 %vm357_vm1, %v2842_v57  ;;  %v5710_v51 = vpop.f32.mrf.mxu1  ;;  %4714 = vmatmul.mubr.msk.bf16.gmra.mxu1 %vm357_vm1, %v5357_v49  ;;  %v5729_v49 = vld [vmem:[%s5047_s25 + $0x70] sm:$0xff]  }
  0xe5   : > { %6446 = vst [vmem:[#allocation12_spill] sm:$0xff] %v5710_v51  ;;  %4751 = vmatprep.mubr.msk.bf16.mxu0 %vm357_vm1, %v2844_v31  ;;  %4717 = vmatprep.mubr.msk.bf16.mxu1 %vm357_vm1, %v5375_v1  ;;  %6449 = vst [vmem:[#allocation15_spill] sm:$0xff] %v5729_v49  ;;  %v2849_v31 = vrot.slane %v5729_v49, 2 }
  0xe6   : > { %v5716_v48 = vpop.f32.mrf.mxu0  ;;  %v5721_v8 = vpop.f32.mrf.mxu1 }
  0xe7   : > { %6447 = vst [vmem:[#allocation13_spill] sm:$0xff] %v5721_v8  ;;  %v5766_v8 = vld [vmem:[%s5047_s25 + $0x80] sm:$0xff]  }
  0xe8   : > { %v5723_v6 = vpop.f32.mrf.mxu0  ;;  %v5725_v54 = vpop.f32.mrf.mxu1  ;;  %6454 = vst [vmem:[#allocation20_spill] sm:$0xff] %v5766_v8 }
  0xe9   : > { %6448 = vst [vmem:[#allocation14_spill] sm:$0xff] %v5725_v54 }
  0xea   : > { %v5731_v63 = vpop.f32.mrf.mxu0  ;;  %v5737_v60 = vpop.f32.mrf.mxu1 }
  0xeb   : > { %6451 = vst [vmem:[#allocation17_spill] sm:$0xff] %v5737_v60 }
  0xec   : > { %v5739_v1 = vpop.f32.mrf.mxu0  ;;  %4752 = vmatmul.mubr.msk.bf16.gmra.mxu0 %vm357_vm1, %v2846_v23  ;;  %v4541_v57 = vpop.f32.mrf.mxu1  ;;  %4718 = vmatmul.mubr.msk.bf16.gmra.mxu1 %vm357_vm1, %v5378_v2  ;;  %v2851_v23 = vrot.slane %v5735_v10, 2 }
  0xed   : > { %4755 = vmatprep.mubr.msk.bf16.mxu0 %vm357_vm1, %v2848_v26  ;;  %v5752_v20 = vadd.f32 %v4541_v57, %v5745_v42  ;;  %4721 = vmatprep.mubr.msk.bf16.mxu1 %vm357_vm1, %v5383_v25  ;;  %v2850_v26 = vsel %vm2386_vm4, %v2847_v7, %v2849_v31  ;;  %v5769_v57 = vld [vmem:[%s5047_s25 + $0x88] sm:$0xff]  }
  0xee   : > { %v5754_v36 = vpop.f32.mrf.mxu0  ;;  %v578_v56 = vpop.f32.mrf.mxu1  ;;  %6455 = vst [vmem:[#allocation21_spill] sm:$0xff] %v5769_v57  ;;  %v2852_v25 = vsel %vm2386_vm4, %v2849_v31, %v2851_v23  ;;  %v2855_v31 = vrot.slane %v5769_v57, 2  ;;  %v3152_v57 = vshll.u32 %v5473_v44, 16 }
  0xef   : > { %6452 = vst [vmem:[#allocation18_spill] sm:$0xff] %v5752_v20  ;;  %v5760_v60 = vadd.f32 %v5745_v42, %v578_v56  ;;  %v595_v56 = vadd.f32 %v5652_v11, %v5745_v42  ;;  %v593_v11 = vadd.f32 %v5745_v42, %v5661_v27 }
  0xf0   : > { %v5762_v54 = vpop.f32.mrf.mxu0  ;;  %v4542_v2 = vpop.f32.mrf.mxu1  ;;  %v3154_v39 = vrot.slane %v3152_v57, 3 }
  0xf1   : > { %6453 = vst [vmem:[#allocation19_spill] sm:$0xff] %v5760_v60  ;;  %v5772_v20 = vadd.f32 %v4542_v2, %v5745_v42  ;;  %v2853_v2 = vrot.slane %v5766_v8, 2  ;;  %v596_v8 = vadd.f32 %v5668_v14, %v5745_v42 }
  0xf2   : > { %v5774_v37 = vpop.f32.mrf.mxu0  ;;  %v581_v5 = vpop.f32.mrf.mxu1 }
  0xf3   : > { %6456 = vst [vmem:[#allocation22_spill] sm:$0xff] %v5772_v20  ;;  %v5780_v60 = vadd.f32 %v5745_v42, %v581_v5  ;;  %v3149_v20 = vshrl.u32 %v5473_v44, 16  ;;  %v2854_v58 = vsel %vm2386_vm4, %v2851_v23, %v2853_v2  ;;  %v5814_v44 = vld [vmem:[%s5047_s25 + $0x98] sm:$0xff]   ;;  %v599_v23 = vadd.f32 %v5678_v19, %v5745_v42 }
  0xf4   : > { %v5782_v51 = vpop.f32.mrf.mxu0  ;;  %4756 = vmatmul.mubr.msk.bf16.gmra.mxu0 %vm357_vm1, %v2850_v26  ;;  %v4547_v7 = vpop.f32.mrf.mxu1  ;;  %4722 = vmatmul.mubr.msk.bf16.gmra.mxu1 %vm357_vm1, %v5387_v9  ;;  %v3141_v26 = vshrl.u32 %v5617_v0, 16  ;;  %v3144_v9 = vshll.u32 %v5617_v0, 16  ;;  %v594_v0 = vadd.f32 %v5745_v42, %v5673_v28  ;;  %v2857_v28 = vrot.slane %v5807_v35, 2 }
  0xf5   : > { %6457 = vst [vmem:[#allocation23_spill] sm:$0xff] %v5780_v60  ;;  %4759 = vmatprep.mubr.msk.bf16.mxu0 %vm357_vm1, %v2852_v25  ;;  %v1146_v5 = vadd.f32 %v4547_v7, %v595_v56  ;;  %4725 = vmatprep.mubr.msk.bf16.mxu1 %vm357_vm1, %v5401_v21  ;;  %v2856_v21 = vsel %vm2386_vm4, %v2853_v2, %v2855_v31 }
  0xf6   : > { %v5792_v60 = vpop.f32.mrf.mxu0  ;;  %v1001_v25 = vpop.f32.mrf.mxu1  ;;  %v3143_v49 = vrot.slane %v3141_v26, 2  ;;  %v3146_v14 = vrot.slane %v3144_v9, 3  ;;  %v597_v19 = vadd.f32 %v5745_v42, %v5687_v38  ;;  %v600_v38 = vadd.f32 %v5694_v15, %v5745_v42 }
  0xf7   : > { %v1144_v27 = vadd.f32 %v1001_v25, %v593_v11  ;;  %v3151_v25 = vrot.slane %v3149_v20, 2  ;;  %v3161_v20 = vshll.u32 %v5479_v50, 16 }
  0xf8   : > { %v5802_v56 = vpop.f32.mrf.mxu0  ;;  %v4548_v7 = vpop.f32.mrf.mxu1 }
  0xf9   : > { %v1147_v10 = vadd.f32 %v4548_v7, %v596_v8  ;;  %v3158_v8 = vshrl.u32 %v5479_v50, 16  ;;  %v3155_v7 = vor.u32 %v3154_v39, %v3151_v25  ;;  %v3170_v50 = vshll.u32 %v5502_v61, 16 }
  0xfa   : > { %v5811_v32 = vpop.f32.mrf.mxu0  ;;  %v1004_v11 = vpop.f32.mrf.mxu1  ;;  %v598_v39 = vadd.f32 %v5745_v42, %v5699_v41 }
  0xfb   : > { %v1145_v29 = vadd.f32 %v1004_v11, %v594_v0 }
  0xfc   : > { %v4585_v2 = vpop.f32.mrf.mxu0  ;;  %4760 = vmatmul.mubr.msk.bf16.gmra.mxu0 %vm357_vm1, %v2854_v58  ;;  %v4551_v40 = vpop.f32.mrf.mxu1  ;;  %4726 = vmatmul.mubr.msk.bf16.gmra.mxu1 %vm357_vm1, %v5404_v24  ;;  %v2859_v58 = vrot.slane %v5814_v44, 2  ;;  %v3147_v24 = vor.u32 %v3146_v14, %v3143_v49  ;;  %v4962_v49 = vld [vmem:[%s5047_s25 + $0xa0] ss:$0 sps:$4 sm:$0x33]   ;;  %v3160_v14 = vrot.slane %v3158_v8, 2 }
  0xfd   : > { %v5819_v45 = vadd.f32 %v4585_v2, %v1146_v5  ;;  %4763 = vmatprep.mubr.msk.bf16.mxu0 %vm357_vm1, %v2856_v21  ;;  %v1150_v57 = vadd.f32 %v4551_v40, %v599_v23  ;;  %4729 = vmatprep.mubr.msk.bf16.mxu1 %vm357_vm1, %v5432_v17  ;;  %v3167_v21 = vshrl.u32 %v5502_v61, 16  ;;  %v2858_v17 = vsel %vm2386_vm4, %v2855_v31, %v2857_v28 }
  0xfe   : > { %v1315_v26 = vpop.f32.mrf.mxu0  ;;  %v1017_v5 = vpop.f32.mrf.mxu1  ;;  %v2860_v61 = vsel %vm2386_vm4, %v2857_v28, %v2859_v58  ;;  %v3163_v2 = vrot.slane %v3161_v20, 3  ;;  %v603_v31 = vadd.f32 %v5707_v46, %v5745_v42  ;;  %v3176_v28 = vshrl.u32 %v5506_v30, 16 }
  0xff   : > { %v5832_v9 = vadd.f32 %v1315_v26, %v1144_v27  ;;  %v1148_v40 = vadd.f32 %v1017_v5, %v597_v19  ;;  %v3156_v19 = vsel %vm3139_vm7, %v3147_v24, %v3155_v7  ;;  %v3169_v5 = vrot.slane %v3167_v21, 2 }
 0x100   : > { %v4586_v0 = vpop.f32.mrf.mxu0  ;;  %v4552_v11 = vpop.f32.mrf.mxu1  ;;  %v3179_v20 = vshll.u32 %v5506_v30, 16  ;;  %v601_v46 = vadd.f32 %v5745_v42, %v5716_v48 }
 0x101   : > { %v5838_v23 = vadd.f32 %v4586_v0, %v1147_v10  ;;  %v1151_v27 = vadd.f32 %v4552_v11, %v600_v38  ;;  %v3172_v10 = vrot.slane %v3170_v50, 3  ;;  %v3164_v50 = vor.u32 %v3163_v2, %v3160_v14 }
 0x102   : > { %v1318_v25 = vpop.f32.mrf.mxu0  ;;  %v1020_v26 = vpop.f32.mrf.mxu1  ;;  %v3181_v14 = vrot.slane %v3179_v20, 3 }
 0x103   : > { %v5845_v15 = vadd.f32 %v1318_v25, %v1145_v29  ;;  %v1149_v0 = vadd.f32 %v1020_v26, %v598_v39  ;;  %v2861_v29 = vrot.slane %v4962_v49, 2  ;;  %v3188_v49 = vshll.u32 %v5530_v16, 16 }
 0x104   : > { %v4589_v8 = vpop.f32.mrf.mxu0  ;;  %4764 = vmatmul.mubr.msk.bf16.gmra.mxu0 %vm357_vm1, %v2858_v17  ;;  %v4555_v41 = vpop.f32.mrf.mxu1  ;;  %4730 = vmatmul.mubr.msk.bf16.gmra.mxu1 %vm357_vm1, %v5443_v3  ;;  %v3173_v17 = vor.u32 %v3172_v10, %v3169_v5  ;;  %v3185_v3 = vshrl.u32 %v5530_v16, 16  ;;  %v604_v39 = vadd.f32 %v5723_v6, %v5745_v42  ;;  %v3165_v10 = vsel %vm3139_vm7, %v3155_v7, %v3164_v50 }
 0x105   : > { %v5851_v38 = vadd.f32 %v4589_v8, %v1150_v57  ;;  %4767 = vmatprep.mubr.msk.bf16.mxu0 %vm357_vm1, %v2860_v61  ;;  %v1154_v24 = vadd.f32 %v4555_v41, %v603_v31  ;;  %4773 = vmatprep.mubr.msk.bf16.mxu1 %vm357_vm1, %v3156_v19  ;;  %v2862_v26 = vsel %vm2386_vm4, %v2859_v58, %v2861_v29  ;;  %v3178_v19 = vrot.slane %v3176_v28, 2 }
 0x106   : > { %v1331_v21 = vpop.f32.mrf.mxu0  ;;  %v1033_v57 = vpop.f32.mrf.mxu1  ;;  %v3174_v6 = vsel %vm3139_vm7, %v3164_v50, %v3173_v17  ;;  %v3187_v8 = vrot.slane %v3185_v3, 2  ;;  %v3190_v41 = vrot.slane %v3188_v49, 3  ;;  %v3203_v3 = vshrl.u32 %v5558_v33, 16 }
 0x107   : > { %v5861_v11 = vadd.f32 %v1331_v21, %v1148_v40  ;;  %v1152_v30 = vadd.f32 %v1033_v57, %v601_v46  ;;  %v602_v40 = vadd.f32 %v5745_v42, %v5731_v63  ;;  %v3182_v7 = vor.u32 %v3181_v14, %v3178_v19 }
 0x108   : > { %v4590_v25 = vpop.f32.mrf.mxu0  ;;  %v4556_v61 = vpop.f32.mrf.mxu1  ;;  %v3197_v21 = vshll.u32 %v5534_v12, 16  ;;  %v3191_v57 = vor.u32 %v3190_v41, %v3187_v8  ;;  %v608_v49 = vadd.f32 %v5762_v54, %v5745_v42  ;;  %v3205_v54 = vrot.slane %v3203_v3, 2 }
 0x109   : > { %v5867_v48 = vadd.f32 %v4590_v25, %v1151_v27  ;;  %v1155_v2 = vadd.f32 %v4556_v61, %v604_v39  ;;  %v607_v27 = vadd.f32 %v5739_v1, %v5745_v42  ;;  %v3194_v1 = vshrl.u32 %v5534_v12, 16 }
 0x10a   : > { %v1334_v5 = vpop.f32.mrf.mxu0  ;;  %v1036_v16 = vpop.f32.mrf.mxu1  ;;  %v606_v12 = vadd.f32 %v5745_v42, %v5774_v37  ;;  %v3212_v41 = vshrl.u32 %v5562_v55, 16 }
 0x10b   : > { %v5873_v31 = vadd.f32 %v1334_v5, %v1149_v0  ;;  %v1153_v58 = vadd.f32 %v1036_v16, %v602_v40  ;;  %v605_v0 = vadd.f32 %v5745_v42, %v5754_v36  ;;  %v3196_v14 = vrot.slane %v3194_v1, 2 }
 0x10c   : > { %v4593_v29 = vpop.f32.mrf.mxu0  ;;  %4768 = vmatmul.mubr.msk.bf16.gmra.mxu0 %vm357_vm1, %v2862_v26  ;;  %v4559_v28 = vpop.f32.mrf.mxu1  ;;  %4774 = vmatmul.mubr.msk.bf16.vlgmr.msra.gmra.mxu1 %vm357_vm1, %v3165_v10  ;;  %v3183_v26 = vsel %vm3139_vm7, %v3173_v17, %v3182_v7  ;;  %v3199_v40 = vrot.slane %v3197_v21, 3 }
 0x10d   : > { %v5879_v63 = vadd.f32 %v4593_v29, %v1154_v24  ;;  %4811 = vmatprep.mubr.msk.bf16.mxu0 %vm357_vm1, %v5486_v59  ;;  %v1158_v20 = vadd.f32 %v4559_v28, %v607_v27  ;;  %4777 = vmatprep.mubr.msk.bf16.mxu1 %vm357_vm1, %v3174_v6  ;;  %v3206_v59 = vshll.u32 %v5558_v33, 16  ;;  %v3192_v33 = vsel %vm3139_vm7, %v3182_v7, %v3191_v57 }
 0x10e   : > { %v1347_v46 = vpop.f32.mrf.mxu0  ;;  %v1049_v50 = vpop.f32.mrf.mxu1  ;;  %v3215_v27 = vshll.u32 %v5562_v55, 16 }
 0x10f   : > { %v5889_v24 = vadd.f32 %v1347_v46, %v1152_v30  ;;  %v1156_v36 = vadd.f32 %v1049_v50, %v605_v0  ;;  %v3208_v16 = vrot.slane %v3206_v59, 3  ;;  %v612_v46 = vadd.f32 %v5802_v56, %v5745_v42 }
 0x110   : > { %v4594_v39 = vpop.f32.mrf.mxu0  ;;  %v4560_v25 = vpop.f32.mrf.mxu1  ;;  %v3214_v50 = vrot.slane %v3212_v41, 2  ;;  %v3217_v3 = vrot.slane %v3215_v27, 3  ;;  %v610_v59 = vadd.f32 %v5745_v42, %v5811_v32 }
 0x111   : > { %v5895_v61 = vadd.f32 %v4594_v39, %v1155_v2  ;;  %v1159_v30 = vadd.f32 %v4560_v25, %v608_v49  ;;  %v611_v2 = vadd.f32 %v5782_v51, %v5745_v42  ;;  %v609_v51 = vadd.f32 %v5745_v42, %v5792_v60 }
 0x112   : > { %v1350_v19 = vpop.f32.mrf.mxu0  ;;  %v1052_v5 = vpop.f32.mrf.mxu1  ;;  %v3209_v0 = vor.u32 %v3208_v16, %v3205_v54 }
 0x113   : > { %v5900_v10 = vadd.f32 %v1350_v19, %v1153_v58  ;;  %v1157_v6 = vadd.f32 %v1052_v5, %v606_v12  ;;  %v613_v5 = vadd.f32 %v5745_v42, %v5666_v62 }
 0x114   : > { %v4597_v8 = vpop.f32.mrf.mxu0  ;;  %4812 = vmatmul.mubr.msk.bf16.vlgmr.msra.gmra.mxu0 %vm357_vm1, %v5491_v13  ;;  %v4563_v37 = vpop.f32.mrf.mxu1  ;;  %4778 = vmatmul.mubr.msk.bf16.gmra.mxu1 %vm357_vm1, %v3183_v26  ;;  %v3200_v13 = vor.u32 %v3199_v40, %v3196_v14 }
 0x115   : > { %v5907_v17 = vadd.f32 %v4597_v8, %v1158_v20  ;;  %4815 = vmatprep.mubr.msk.bf16.mxu0 %vm357_vm1, %v5514_v53  ;;  %v1162_v58 = vadd.f32 %v4563_v37, %v611_v2  ;;  %4781 = vmatprep.mubr.msk.bf16.mxu1 %vm357_vm1, %v3192_v33  ;;  %v3221_v20 = vshrl.u32 %v5586_v22, 16  ;;  %v3224_v53 = vshll.u32 %v5586_v22, 16 }
 0x116   : > { %v1363_v29 = vpop.f32.mrf.mxu0  ;;  %v1065_v28 = vpop.f32.mrf.mxu1  ;;  %v3201_v39 = vsel %vm3139_vm7, %v3191_v57, %v3200_v13  ;;  %v3210_v22 = vsel %vm3139_vm7, %v3200_v13, %v3209_v0  ;;  %v3218_v57 = vor.u32 %v3217_v3, %v3214_v50  ;;  %v3239_v8 = vshrl.u32 %v5703_v4, 16  ;;  %v6459_v3 = vld [vmem:[#allocation8_spill] sm:$0xff] }
 0x117   : > { %v5917_v7 = vadd.f32 %v1363_v29, %v1156_v36  ;;  %v1160_v55 = vadd.f32 %v1065_v28, %v609_v51  ;;  %v3223_v56 = vrot.slane %v3221_v20, 2  ;;  %v3226_v12 = vrot.slane %v3224_v53, 3  ;;  %v6458_v29 = vld [vmem:[#allocation7_spill] sm:$0xff] }
 0x118   : > { %v4598_v1 = vpop.f32.mrf.mxu0  ;;  %v4564_v21 = vpop.f32.mrf.mxu1  ;;  %v616_v37 = vadd.f32 %v5670_v47, %v5745_v42  ;;  %v614_v13 = vadd.f32 %v5745_v42, %v6458_v29  ;;  %v3241_v47 = vrot.slane %v3239_v8, 2 }
 0x119   : > { %v5923_v60 = vadd.f32 %v4598_v1, %v1159_v30  ;;  %v1163_v49 = vadd.f32 %v4564_v21, %v612_v46  ;;  %v615_v30 = vadd.f32 %v5655_v18, %v5745_v42  ;;  %v3230_v18 = vshrl.u32 %v5590_v52, 16 }
 0x11a   : > { %v1366_v36 = vpop.f32.mrf.mxu0  ;;  %v1068_v25 = vpop.f32.mrf.mxu1 }
 0x11b   : > { %v5928_v26 = vadd.f32 %v1366_v36, %v1157_v6  ;;  %v1161_v19 = vadd.f32 %v1068_v25, %v610_v59  ;;  %v3227_v6 = vor.u32 %v3226_v12, %v3223_v56  ;;  %v3232_v53 = vrot.slane %v3230_v18, 2  ;;  %v6462_v56 = vld [vmem:[#allocation15_spill] sm:$0xff] }
 0x11c   : > { %v4601_v14 = vpop.f32.mrf.mxu0  ;;  %4816 = vmatmul.mubr.msk.bf16.gmra.mxu0 %vm357_vm1, %v5519_v43  ;;  %v4567_v32 = vpop.f32.mrf.mxu1  ;;  %4782 = vmatmul.mubr.msk.bf16.gmra.mxu1 %vm357_vm1, %v3201_v39  ;;  %v3233_v43 = vshll.u32 %v5590_v52, 16  ;;  %v619_v59 = vadd.f32 %v6459_v3, %v5745_v42  ;;  %v3248_v12 = vshrl.u32 %v6462_v56, 16 }
 0x11d   : > { %v5935_v40 = vadd.f32 %v4601_v14, %v1162_v58  ;;  %4819 = vmatprep.mubr.msk.bf16.mxu0 %vm357_vm1, %v5542_v34  ;;  %v1166_v33 = vadd.f32 %v4567_v32, %v615_v30  ;;  %4785 = vmatprep.mubr.msk.bf16.mxu1 %vm357_vm1, %v3210_v22  ;;  %v3242_v34 = vshll.u32 %v5703_v4, 16  ;;  %v3219_v58 = vsel %vm3139_vm7, %v3209_v0, %v3218_v57  ;;  %v6460_v0 = vld [vmem:[#allocation2_spill] sm:$0xff]  ;;  %v6461_v22 = vld [vmem:[#allocation3_spill] sm:$0xff] }
 0x11e   : > { %v1379_v54 = vpop.f32.mrf.mxu0  ;;  %v1081_v16 = vpop.f32.mrf.mxu1  ;;  %v3235_v46 = vrot.slane %v3233_v43, 3  ;;  %v3228_v21 = vsel %vm3139_vm7, %v3218_v57, %v3227_v6  ;;  %v3251_v30 = vshll.u32 %v6462_v56, 16  ;;  %v6464_v43 = vld [vmem:[#allocation16_spill] sm:$0xff] }
 0x11f   : > { %v5945_v2 = vadd.f32 %v1379_v54, %v1160_v55  ;;  %v1164_v62 = vadd.f32 %v1081_v16, %v613_v5  ;;  %v3244_v50 = vrot.slane %v3242_v34, 3  ;;  %v3257_v16 = vshrl.u32 %v6464_v43, 16  ;;  %v6465_v34 = vld [vmem:[#allocation10_spill] sm:$0xff] }
 0x120   : > { %v4602_v41 = vpop.f32.mrf.mxu0  ;;  %v4568_v27 = vpop.f32.mrf.mxu1  ;;  %v3236_v5 = vor.u32 %v3235_v46, %v3232_v53  ;;  %v3260_v8 = vshll.u32 %v6464_v43, 16 }
 0x121   : > { %v5951_v51 = vadd.f32 %v4602_v41, %v1163_v49  ;;  %v1167_v28 = vadd.f32 %v4568_v27, %v616_v37  ;;  %v3245_v18 = vor.u32 %v3244_v50, %v3241_v47  ;;  %v620_v37 = vadd.f32 %v6465_v34, %v5745_v42 }
 0x122   : > { %v1382_v20 = vpop.f32.mrf.mxu0  ;;  %v1084_v55 = vpop.f32.mrf.mxu1  ;;  %v3608_v34 = vrot.slane %v5703_v4, 3 }
 0x123   : > { %v5956_v1 = vadd.f32 %v1382_v20, %v1161_v19  ;;  %v1165_v49 = vadd.f32 %v1084_v55, %v614_v13  ;;  %v6463_v19 = vld [vmem:[#allocation9_spill] sm:$0xff]  ;;  %v3250_v13 = vrot.slane %v3248_v12, 2  ;;  %v3253_v20 = vrot.slane %v3251_v30, 3  ;;  %v6466_v55 = vld [vmem:[#allocation11_spill] sm:$0xff]  ;;  %v6468_v12 = vld [vmem:[#allocation4_spill] sm:$0xff] }
 0x124   : > { %v4605_v36 = vpop.f32.mrf.mxu0  ;;  %4820 = vmatmul.mubr.msk.bf16.gmra.mxu0 %vm357_vm1, %v6460_v0  ;;  %v4571_v39 = vpop.f32.mrf.mxu1  ;;  %4786 = vmatmul.mubr.msk.bf16.gmra.mxu1 %vm357_vm1, %v3219_v58  ;;  %v617_v14 = vadd.f32 %v5745_v42, %v6463_v19  ;;  %v618_v53 = vadd.f32 %v5745_v42, %v6466_v55  ;;  %v3246_v3 = vsel %vm3139_vm7, %v3236_v5, %v3245_v18  ;;  %v6467_v0 = vld [vmem:[#allocation12_spill] sm:$0xff]  ;;  %v6472_v55 = vld [vmem:[#allocation21_spill] sm:$0xff] }
 0x125   : > { %v5963_v25 = vadd.f32 %v4605_v36, %v1166_v33  ;;  %4823 = vmatprep.mubr.msk.bf16.mxu0 %vm357_vm1, %v6461_v22  ;;  %v1170_v32 = vadd.f32 %v4571_v39, %v619_v59  ;;  %4789 = vmatprep.mubr.msk.bf16.mxu1 %vm357_vm1, %v3228_v21  ;;  %v3237_v21 = vsel %vm3139_vm7, %v3227_v6, %v3236_v5  ;;  %v3259_v59 = vrot.slane %v3257_v16, 2  ;;  %v6469_v6 = vld [vmem:[#allocation5_spill] sm:$0xff] }
 0x126   : > { %v1395_v57 = vpop.f32.mrf.mxu0  ;;  %v1097_v54 = vpop.f32.mrf.mxu1  ;;  %v3262_v36 = vrot.slane %v3260_v8, 3  ;;  %v6471_v5 = vld [vmem:[#allocation13_spill] sm:$0xff] }
 0x127   : > { %v5973_v33 = vadd.f32 %v1395_v57, %v1164_v62  ;;  %v1168_v41 = vadd.f32 %v1097_v54, %v617_v14  ;;  %v6470_v14 = vld [vmem:[#allocation20_spill] sm:$0xff]  ;;  %v621_v54 = vadd.f32 %v5745_v42, %v6471_v5 }
 0x128   : > { %v4606_v27 = vpop.f32.mrf.mxu0  ;;  %v4572_v58 = vpop.f32.mrf.mxu1  ;;  %v3266_v57 = vshrl.u32 %v6470_v14, 16 }
 0x129   : > { %v5979_v29 = vadd.f32 %v4606_v27, %v1167_v28  ;;  %v1171_v62 = vadd.f32 %v4572_v58, %v620_v37  ;;  %v623_v28 = vadd.f32 %v6467_v0, %v5745_v42  ;;  %v3263_v58 = vor.u32 %v3262_v36, %v3259_v59 }
 0x12a   : > { %v1398_v46 = vpop.f32.mrf.mxu0  ;;  %v1100_v47 = vpop.f32.mrf.mxu1  ;;  %v6475_v36 = vrot.slane %v5590_v52, 3  ;;  %v3610_v52 = vrot.slane %v6462_v56, 3  ;;  %v3296_v56 = vshll.u32 %v5814_v44, 16 }
 0x12b   : > { %v5984_v50 = vadd.f32 %v1398_v46, %v1165_v49  ;;  %v1169_v39 = vadd.f32 %v1100_v47, %v618_v53  ;;  %v3254_v49 = vor.u32 %v3253_v20, %v3250_v13  ;;  %v3275_v53 = vshrl.u32 %v6472_v55, 16  ;;  %v6473_v20 = vld [vmem:[#allocation14_spill] sm:$0xff] }
 0x12c   : > { %v4609_v22 = vpop.f32.mrf.mxu0  ;;  %4824 = vmatmul.mubr.msk.bf16.gmra.mxu0 %vm357_vm1, %v6468_v12  ;;  %v4575_v30 = vpop.f32.mrf.mxu1  ;;  %4790 = vmatmul.mubr.msk.bf16.gmra.mxu1 %vm357_vm1, %v3237_v21  ;;  %v3278_v13 = vshll.u32 %v6472_v55, 16  ;;  %v624_v46 = vadd.f32 %v6473_v20, %v5745_v42 }
 0x12d   : > { %v5991_v19 = vadd.f32 %v4609_v22, %v1170_v32  ;;  %4827 = vmatprep.mubr.msk.bf16.mxu0 %vm357_vm1, %v6469_v6  ;;  %v1174_v16 = vadd.f32 %v4575_v30, %v623_v28  ;;  %4793 = vmatprep.mubr.msk.bf16.mxu1 %vm357_vm1, %v3246_v3  ;;  %v3269_v32 = vshll.u32 %v6470_v14, 16  ;;  %v3255_v4 = vsel %vm3139_vm7, %v3245_v18, %v3254_v49  ;;  %v6474_v22 = vld [vmem:[#allocation17_spill] sm:$0xff] }
 0x12e   : > { %v1411_v8 = vpop.f32.mrf.mxu0  ;;  %v1113_v37 = vpop.f32.mrf.mxu1  ;;  %v3268_v3 = vrot.slane %v3266_v57, 2  ;;  %v3609_v30 = vsel %vm3586_vm6, %v6475_v36, %v3608_v34  ;;  %v6476_v57 = vld [vmem:[#allocation6_spill] sm:$0xff] }
 0x12f   : > { %v6002_v27 = vadd.f32 %v1411_v8, %v1168_v41  ;;  %v1172_v21 = vadd.f32 %v1113_v37, %v621_v54  ;;  %v622_v41 = vadd.f32 %v5745_v42, %v6474_v22  ;;  %v3271_v6 = vrot.slane %v3269_v32, 3  ;;  %v6477_v32 = vld [vmem:[#allocation18_spill] sm:$0xff] }
 0x130   : > { %v4610_v47 = vpop.f32.mrf.mxu0  ;;  %v4576_v0 = vpop.f32.mrf.mxu1  ;;  %v3264_v54 = vsel %vm3139_vm7, %v3254_v49, %v3263_v58  ;;  %v3280_v37 = vrot.slane %v3278_v13, 3  ;;  %v3287_v49 = vshll.u32 %v5807_v35, 16 }
 0x131   : > { %v6008_v28 = vadd.f32 %v4610_v47, %v1171_v62  ;;  %v1175_v12 = vadd.f32 %v4576_v0, %v624_v46  ;;  %v3277_v62 = vrot.slane %v3275_v53, 2  ;;  %v3272_v47 = vor.u32 %v3271_v6, %v3268_v3 }
 0x132   : > { %v1414_v59 = vpop.f32.mrf.mxu0  ;;  %v1116_v5 = vpop.f32.mrf.mxu1  ;;  %v3612_v0 = vrot.slane %v6464_v43, 3  ;;  %v3289_v6 = vrot.slane %v3287_v49, 3  ;;  %v6479_v43 = vld [vmem:[#allocation22_spill] sm:$0xff] }
 0x133   : > { %v6016_v8 = vadd.f32 %v1414_v59, %v1169_v39  ;;  %v1173_v20 = vadd.f32 %v1116_v5, %v622_v41  ;;  %v3284_v39 = vshrl.u32 %v5807_v35, 16  ;;  %v3293_v41 = vshrl.u32 %v5814_v44, 16  ;;  %v6478_v59 = vld [vmem:[#allocation19_spill] sm:$0xff] }
 0x134   : > { %v4613_v18 = vpop.f32.mrf.mxu0  ;;  %4828 = vmatmul.mubr.msk.bf16.gmra.mxu0 %vm357_vm1, %v6476_v57  ;;  %v4579_v42 = vpop.f32.mrf.mxu1  ;;  %4794 = vmatmul.mubr.msk.bf16.gmra.mxu1 %vm357_vm1, %v3255_v4  ;;  %v3281_v4 = vor.u32 %v3280_v37, %v3277_v62  ;;  %v3613_v62 = vsel %vm3586_vm6, %v3610_v52, %v3612_v0  ;;  %v6043_v37 = vld [vmem:[%s5047_s25 + $0xa0] ss:$0 sps:$4 sm:$0x77]  }
 0x135   : > { %v6021_v46 = vadd.f32 %v4613_v18, %v1174_v16  ;;  %4831 = vmatprep.mubr.msk.bf16.mxu0 %vm357_vm1, %v3609_v30  ;;  %v1178_v53 = vadd.f32 %v4579_v42, %v6477_v32  ;;  %4797 = vmatprep.mubr.msk.bf16.mxu1 %vm357_vm1, %v3264_v54  ;;  %v3611_v54 = vsel %vm3586_vm6, %v3608_v34, %v3610_v52  ;;  %v3286_v3 = vrot.slane %v3284_v39, 2 }
 0x136   : > { %v1427_v13 = vpop.f32.mrf.mxu0  ;;  %v1129_v16 = vpop.f32.mrf.mxu1 }
 0x137   : > { %v6031_v22 = vadd.f32 %v1427_v13, %v1172_v21  ;;  %v1176_v36 = vadd.f32 %v1129_v16, %v6478_v59  ;;  %v3273_v21 = vsel %vm3139_vm7, %v3263_v58, %v3272_v47  ;;  %v3282_v16 = vsel %vm3139_vm7, %v3272_v47, %v3281_v4 }
 0x138   : > { %v4614_v30 = vpop.f32.mrf.mxu0  ;;  %v4580_v5 = vpop.f32.mrf.mxu1  ;;  %v3298_v59 = vrot.slane %v3296_v56, 3  ;;  %v3290_v58 = vor.u32 %v3289_v6, %v3286_v3  ;;  %v3302_v56 = vshrl.u32 %v6043_v37, 16 }
 0x139   : > { %v6036_v18 = vadd.f32 %v4614_v30, %v1175_v12  ;;  %v1179_v57 = vadd.f32 %v4580_v5, %v6479_v43  ;;  %v3295_v12 = vrot.slane %v3293_v41, 2  ;;  %v6480_v30 = vld [vmem:[#allocation23_spill] sm:$0xff]  ;;  %v3616_v41 = vrot.slane %v6472_v55, 3 }
 0x13a   : > { %v1430_v42 = vpop.f32.mrf.mxu0  ;;  %v1132_v32 = vpop.f32.mrf.mxu1 }
 0x13b   : > { %v6045_v13 = vadd.f32 %v1430_v42, %v1173_v20  ;;  %v1177_v34 = vadd.f32 %v1132_v32, %v6480_v30  ;;  %v3614_v20 = vrot.slane %v6470_v14, 3  ;;  %v3299_v42 = vor.u32 %v3298_v59, %v3295_v12 }
 0x13c   : > { %v4617_v39 = vpop.f32.mrf.mxu0  ;;  %4832 = vmatmul.mubr.msk.bf16.gmra.mxu0 %vm357_vm1, %v3611_v54  ;;  %v4623_v5 = vpop.f32.mrf.mxu1  ;;  %4798 = vmatmul.mubr.msk.bf16.gmra.mxu1 %vm357_vm1, %v3273_v21  ;;  %v3304_v30 = vrot.slane %v3302_v56, 2 }
 0x13d   : > { %v6050_v49 = vadd.f32 %v4617_v39, %v1178_v53  ;;  %4835 = vmatprep.mubr.msk.bf16.mxu0 %vm357_vm1, %v3613_v62  ;;  %v1899_v52 = vadd.f32 %v4623_v5, %v5819_v45  ;;  %4801 = vmatprep.mubr.msk.bf16.mxu1 %vm357_vm1, %v3282_v16  ;;  %v3305_v53 = vshll.u32 %v6043_v37, 16  ;;  %v3291_v45 = vsel %vm3139_vm7, %v3281_v4, %v3290_v58 }
 0x13e   : > { %v1443_v47 = vpop.f32.mrf.mxu0  ;;  %v1754_v43 = vpop.f32.mrf.mxu1  ;;  %v3615_v62 = vsel %vm3586_vm6, %v3612_v0, %v3614_v20  ;;  %v3617_v16 = vsel %vm3586_vm6, %v3614_v20, %v3616_v41 }
 0x13f   : > { %v6060_v54 = vadd.f32 %v1443_v47, %v1176_v36  ;;  %v1897_v21 = vadd.f32 %v1754_v43, %v5832_v9  ;;  %v3307_v36 = vrot.slane %v3305_v53, 3  ;;  %v3300_v9 = vsel %vm3139_vm7, %v3290_v58, %v3299_v42 }
 0x140   : > { %v4618_v3 = vpop.f32.mrf.mxu0  ;;  %v4624_v14 = vpop.f32.mrf.mxu1 }
 0x141   : > { %v6063_v6 = vadd.f32 %v4618_v3, %v1179_v57  ;;  %v1900_v55 = vadd.f32 %v4624_v14, %v5838_v23  ;;  %v3618_v23 = vrot.slane %v5807_v35, 3  ;;  %v3308_v58 = vor.u32 %v3307_v36, %v3304_v30 }
 0x142   : > { %v1446_v32 = vpop.f32.mrf.mxu0  ;;  %v1757_v12 = vpop.f32.mrf.mxu1 }
 0x143   : > { %v6069_v39 = vadd.f32 %v1446_v32, %v1177_v34  ;;  %v1898_v57 = vadd.f32 %v1757_v12, %v5845_v15  ;;  %v3620_v15 = vrot.slane %v5814_v44, 3  ;;  %v3619_v3 = vsel %vm3586_vm6, %v3616_v41, %v3618_v23 }
 0x144   : > { %v4661_v59 = vpop.f32.mrf.mxu0  ;;  %4836 = vmatmul.mubr.msk.bf16.gmra.mxu0 %vm357_vm1, %v3615_v62  ;;  %v4627_v4 = vpop.f32.mrf.mxu1  ;;  %4802 = vmatmul.mubr.msk.bf16.gmra.mxu1 %vm357_vm1, %v3291_v45  ;;  %v3309_v14 = vsel %vm3139_vm7, %v3299_v42, %v3308_v58 }
 0x145   : > { %v6074_v5 = vadd.f32 %v4661_v59, %v1899_v52  ;;  %4839 = vmatprep.mubr.msk.bf16.mxu0 %vm357_vm1, %v3617_v16  ;;  %v1903_v0 = vadd.f32 %v4627_v4, %v5851_v38  ;;  %4805 = vmatprep.mubr.msk.bf16.mxu1 %vm357_vm1, %v3300_v9  ;;  %v3621_v45 = vsel %vm3586_vm6, %v3618_v23, %v3620_v15 }
 0x146   : > { %v2201_v34 = vpop.f32.mrf.mxu0  ;;  %v1770_v20 = vpop.f32.mrf.mxu1 }
 0x147   : > { %v6082_v47 = vadd.f32 %v2201_v34, %v1897_v21  ;;  %v1901_v52 = vadd.f32 %v1770_v20, %v5861_v11 }
 0x148   : > { %v4662_v56 = vpop.f32.mrf.mxu0  ;;  %v4628_v53 = vpop.f32.mrf.mxu1 }
 0x149   : > { %v6085_v43 = vadd.f32 %v4662_v56, %v1900_v55  ;;  %v1904_v35 = vadd.f32 %v4628_v53, %v5867_v48  ;;  %v3622_v48 = vrot.slane %v6043_v37, 3 }
 0x14a   : > { %v2204_v38 = vpop.f32.mrf.mxu0  ;;  %v1773_v62 = vpop.f32.mrf.mxu1 }
 0x14b   : > { %v6091_v44 = vadd.f32 %v2204_v38, %v1898_v57  ;;  %v1902_v21 = vadd.f32 %v1773_v62, %v5873_v31  ;;  %v3623_v57 = vsel %vm3586_vm6, %v3620_v15, %v3622_v48 }
 0x14c   : > { %v4665_v32 = vpop.f32.mrf.mxu0  ;;  %4840 = vmatmul.mubr.msk.bf16.gmra.mxu0 %vm357_vm1, %v3619_v3  ;;  %v4631_v11 = vpop.f32.mrf.mxu1  ;;  %4806 = vmatmul.mubr.msk.bf16.gmra.mxu1 %vm357_vm1, %v3309_v14 }
 0x14d   : > { %v6095_v55 = vadd.f32 %v4665_v32, %v1903_v0  ;;  %4843 = vmatprep.mubr.msk.bf16.mxu0 %vm357_vm1, %v3621_v45  ;;  %v1907_v41 = vadd.f32 %v4631_v11, %v5879_v63 }
 0x14e   : > { %v2217_v42 = vpop.f32.mrf.mxu0  ;;  %v1786_v16 = vpop.f32.mrf.mxu1 }
 0x14f   : > { %v6101_v30 = vadd.f32 %v2217_v42, %v1901_v52  ;;  %v1905_v31 = vadd.f32 %v1786_v16, %v5889_v24 }
 0x150   : > { %v4666_v36 = vpop.f32.mrf.mxu0  ;;  %v4632_v12 = vpop.f32.mrf.mxu1 }
 0x151   : > { %v6104_v9 = vadd.f32 %v4666_v36, %v1904_v35  ;;  %v1908_v59 = vadd.f32 %v4632_v12, %v5895_v61 }
 0x152   : > { %v2220_v4 = vpop.f32.mrf.mxu0  ;;  %v1789_v23 = vpop.f32.mrf.mxu1 }
 0x153   : > { %v6108_v0 = vadd.f32 %v2220_v4, %v1902_v21  ;;  %v1906_v63 = vadd.f32 %v1789_v23, %v5900_v10 }
 0x154   : > { %v4669_v37 = vpop.f32.mrf.mxu0  ;;  %4844 = vmatmul.mubr.msk.bf16.gmra.mxu0 %vm357_vm1, %v3623_v57  ;;  %v4635_v34 = vpop.f32.mrf.mxu1 }
 0x155   : > { %v6112_v58 = vadd.f32 %v4669_v37, %v1907_v41  ;;  %v1911_v24 = vadd.f32 %v4635_v34, %v5907_v17 }
 0x156   : > { %v2233_v20 = vpop.f32.mrf.mxu0  ;;  %v1802_v52 = vpop.f32.mrf.mxu1 }
 0x157   : > { %v6115_v56 = vadd.f32 %v2233_v20, %v1905_v31  ;;  %v1909_v61 = vadd.f32 %v1802_v52, %v5917_v7 }
 0x158   : > { %v4670_v15 = vpop.f32.mrf.mxu0  ;;  %v4636_v53 = vpop.f32.mrf.mxu1 }
 0x159   : > { %v6118_v3 = vadd.f32 %v4670_v15, %v1908_v59  ;;  %v1912_v10 = vadd.f32 %v4636_v53, %v5923_v60 }
 0x15a   : > { %v2236_v35 = vpop.f32.mrf.mxu0  ;;  %v1805_v38 = vpop.f32.mrf.mxu1 }
 0x15b   : > { %v6121_v14 = vadd.f32 %v2236_v35, %v1906_v63  ;;  %v1910_v45 = vadd.f32 %v1805_v38, %v5928_v26 }
 0x15c   : > { %v4673_v62 = vpop.f32.mrf.mxu0  ;;  %v4639_v17 = vpop.f32.mrf.mxu1 }
 0x15d   : > { %v6124_v21 = vadd.f32 %v4673_v62, %v1911_v24  ;;  %v1915_v32 = vadd.f32 %v4639_v17, %v5935_v40 }
 0x15e   : > { %v2249_v11 = vpop.f32.mrf.mxu0  ;;  %v1818_v7 = vpop.f32.mrf.mxu1 }
 0x15f   : > { %v6127_v48 = vadd.f32 %v2249_v11, %v1909_v61  ;;  %v1913_v41 = vadd.f32 %v1818_v7, %v5945_v2 }
 0x160   : > { %v4674_v42 = vpop.f32.mrf.mxu0  ;;  %v4640_v60 = vpop.f32.mrf.mxu1 }
 0x161   : > { %v6130_v16 = vadd.f32 %v4674_v42, %v1912_v10  ;;  %v1916_v31 = vadd.f32 %v4640_v60, %v5951_v51 }
 0x162   : > { %v2252_v36 = vpop.f32.mrf.mxu0  ;;  %v1821_v26 = vpop.f32.mrf.mxu1 }
 0x163   : > { %v6133_v12 = vadd.f32 %v2252_v36, %v1910_v45  ;;  %v1914_v57 = vadd.f32 %v1821_v26, %v5956_v1 }
 0x164   : > { %v4677_v59 = vpop.f32.mrf.mxu0  ;;  %v4643_v40 = vpop.f32.mrf.mxu1 }
 0x165   : > { %v6136_v4 = vadd.f32 %v4677_v59, %v1915_v32  ;;  %v1919_v23 = vadd.f32 %v4643_v40, %v5963_v25 }
 0x166   : > { %v2265_v63 = vpop.f32.mrf.mxu0  ;;  %v1834_v2 = vpop.f32.mrf.mxu1 }
 0x167   : > { %v6139_v37 = vadd.f32 %v2265_v63, %v1913_v41  ;;  %v1917_v34 = vadd.f32 %v1834_v2, %v5973_v33 }
 0x168   : > { %v4678_v24 = vpop.f32.mrf.mxu0  ;;  %v4644_v51 = vpop.f32.mrf.mxu1 }
 0x169   : > { %v6142_v20 = vadd.f32 %v4678_v24, %v1916_v31  ;;  %v1920_v52 = vadd.f32 %v4644_v51, %v5979_v29 }
 0x16a   : > { %v2268_v61 = vpop.f32.mrf.mxu0  ;;  %v1837_v1 = vpop.f32.mrf.mxu1 }
 0x16b   : > { %v6145_v15 = vadd.f32 %v2268_v61, %v1914_v57  ;;  %v1918_v53 = vadd.f32 %v1837_v1, %v5984_v50 }
 0x16c   : > { %v4681_v10 = vpop.f32.mrf.mxu0  ;;  %v4647_v25 = vpop.f32.mrf.mxu1 }
 0x16d   : > { %v6148_v35 = vadd.f32 %v4681_v10, %v1919_v23  ;;  %v1923_v38 = vadd.f32 %v4647_v25, %v5991_v19 }
 0x16e   : > { %v2281_v45 = vpop.f32.mrf.mxu0  ;;  %v1850_v33 = vpop.f32.mrf.mxu1 }
 0x16f   : > { %v6151_v62 = vadd.f32 %v2281_v45, %v1917_v34  ;;  %v1921_v17 = vadd.f32 %v1850_v33, %v6002_v27 }
 0x170   : > { %v4682_v32 = vpop.f32.mrf.mxu0  ;;  %v4648_v29 = vpop.f32.mrf.mxu1 }
 0x171   : > { %v6154_v11 = vadd.f32 %v4682_v32, %v1920_v52  ;;  %v1924_v7 = vadd.f32 %v4648_v29, %v6008_v28 }
 0x172   : > { %v2284_v41 = vpop.f32.mrf.mxu0  ;;  %v1853_v50 = vpop.f32.mrf.mxu1 }
 0x173   : > { %v6157_v42 = vadd.f32 %v2284_v41, %v1918_v53  ;;  %v1922_v60 = vadd.f32 %v1853_v50, %v6016_v8 }
 0x174   : > { %v4685_v31 = vpop.f32.mrf.mxu0  ;;  %v4651_v19 = vpop.f32.mrf.mxu1 }
 0x175   : > { %v6160_v36 = vadd.f32 %v4685_v31, %v1923_v38  ;;  %v1927_v26 = vadd.f32 %v4651_v19, %v6021_v46 }
 0x176   : > { %v2297_v57 = vpop.f32.mrf.mxu0  ;;  %v1866_v27 = vpop.f32.mrf.mxu1 }
 0x177   : > { %v6163_v59 = vadd.f32 %v2297_v57, %v1921_v17  ;;  %v1925_v40 = vadd.f32 %v1866_v27, %v6031_v22 }
 0x178   : > { %v4686_v23 = vpop.f32.mrf.mxu0  ;;  %v4652_v28 = vpop.f32.mrf.mxu1 }
 0x179   : > { %v6166_v63 = vadd.f32 %v4686_v23, %v1924_v7  ;;  %v1928_v2 = vadd.f32 %v4652_v28, %v6036_v18 }
 0x17a   : > { %v2300_v34 = vpop.f32.mrf.mxu0  ;;  %v1869_v8 = vpop.f32.mrf.mxu1 }
 0x17b   : > { %v6169_v24 = vadd.f32 %v2300_v34, %v1922_v60  ;;  %v1926_v51 = vadd.f32 %v1869_v8, %v6045_v13 }
 0x17c   : > { %v4689_v52 = vpop.f32.mrf.mxu0  ;;  %v4655_v46 = vpop.f32.mrf.mxu1 }
 0x17d   : > { %v6172_v61 = vadd.f32 %v4689_v52, %v1927_v26  ;;  %v1931_v1 = vadd.f32 %v4655_v46, %v6050_v49 }
 0x17e   : > { %v2313_v53 = vpop.f32.mrf.mxu0  ;;  %v1882_v22 = vpop.f32.mrf.mxu1 }
 0x17f   : > { %v6175_v10 = vadd.f32 %v2313_v53, %v1925_v40  ;;  %v1929_v25 = vadd.f32 %v1882_v22, %v6060_v54 }
 0x180   : > { %v4690_v38 = vpop.f32.mrf.mxu0  ;;  %v4656_v18 = vpop.f32.mrf.mxu1 }
 0x181   : > { %v6178_v45 = vadd.f32 %v4690_v38, %v1928_v2  ;;  %v1932_v33 = vadd.f32 %v4656_v18, %v6063_v6 }
 0x182   : > { %v2316_v17 = vpop.f32.mrf.mxu0  ;;  %v1885_v13 = vpop.f32.mrf.mxu1 }
 0x183   : > { %v6181_v32 = vadd.f32 %v2316_v17, %v1926_v51  ;;  %v1930_v29 = vadd.f32 %v1885_v13, %v6069_v39 }
 0x184   : > { %v4693_v7 = vpop.f32.mrf.mxu0  ;;  %v4699_v41 = vpop.f32.mrf.mxu1 }
 0x185   : > { %v6184_v49 = vadd.f32 %v4693_v7, %v1931_v1  ;;  %v2660_v50 = vadd.f32 %v4699_v41, %v6074_v5 }
 0x186   : > { %v2329_v60 = vpop.f32.mrf.mxu0  ;;  %v2515_v31 = vpop.f32.mrf.mxu1 }
 0x187   : > { %v6187_v54 = vadd.f32 %v2329_v60, %v1929_v25  ;;  %v2658_v19 = vadd.f32 %v2515_v31, %v6082_v47 }
 0x188   : > { %v4694_v26 = vpop.f32.mrf.mxu0  ;;  %v4700_v57 = vpop.f32.mrf.mxu1 }
 0x189   : > { %v6190_v6 = vadd.f32 %v4694_v26, %v1932_v33  ;;  %v2661_v27 = vadd.f32 %v4700_v57, %v6085_v43 }
 0x18a   : > { %v2332_v40 = vpop.f32.mrf.mxu0  ;;  %v2518_v23 = vpop.f32.mrf.mxu1 }
 0x18b   : > { %v6193_v39 = vadd.f32 %v2332_v40, %v1930_v29  ;;  %v2659_v28 = vadd.f32 %v2518_v23, %v6091_v44 }
 0x18c   : > { %v4737_v2 = vpop.f32.mrf.mxu0  ;;  %v4703_v5 = vpop.f32.mrf.mxu1 }
 0x18d   : > { %v6196_v34 = vadd.f32 %v4737_v2, %v2660_v50  ;;  %v2664_v8 = vadd.f32 %v4703_v5, %v6095_v55 }
 0x18e   : > { %v2954_v51 = vpop.f32.mrf.mxu0  ;;  %v2531_v47 = vpop.f32.mrf.mxu1 }
 0x18f   : > { %v6199_v52 = vadd.f32 %v2954_v51, %v2658_v19  ;;  %v2662_v46 = vadd.f32 %v2531_v47, %v6101_v30 }
 0x190   : > { %v4738_v1 = vpop.f32.mrf.mxu0  ;;  %v4704_v43 = vpop.f32.mrf.mxu1 }
 0x191   : > { %v6202_v53 = vadd.f32 %v4738_v1, %v2661_v27  ;;  %v2665_v22 = vadd.f32 %v4704_v43, %v6104_v9 }
 0x192   : > { %v2957_v25 = vpop.f32.mrf.mxu0  ;;  %v2534_v44 = vpop.f32.mrf.mxu1 }
 0x193   : > { %v6205_v38 = vadd.f32 %v2957_v25, %v2659_v28  ;;  %v2663_v18 = vadd.f32 %v2534_v44, %v6108_v0 }
 0x194   : > { %v4741_v33 = vpop.f32.mrf.mxu0  ;;  %v4707_v55 = vpop.f32.mrf.mxu1 }
 0x195   : > { %v6208_v17 = vadd.f32 %v4741_v33, %v2664_v8  ;;  %v2668_v13 = vadd.f32 %v4707_v55, %v6112_v58 }
 0x196   : > { %v2970_v29 = vpop.f32.mrf.mxu0  ;;  %v2547_v30 = vpop.f32.mrf.mxu1 }
 0x197   : > { %v6211_v7 = vadd.f32 %v2970_v29, %v2662_v46  ;;  %v2666_v41 = vadd.f32 %v2547_v30, %v6115_v56 }
 0x198   : > { %v4742_v50 = vpop.f32.mrf.mxu0  ;;  %v4708_v9 = vpop.f32.mrf.mxu1 }
 0x199   : > { %v6214_v60 = vadd.f32 %v4742_v50, %v2665_v22  ;;  %v2669_v31 = vadd.f32 %v4708_v9, %v6118_v3 }
 0x19a   : > { %v2973_v19 = vpop.f32.mrf.mxu0  ;;  %v2550_v0 = vpop.f32.mrf.mxu1 }
 0x19b   : > { %v6217_v26 = vadd.f32 %v2973_v19, %v2663_v18  ;;  %v2667_v57 = vadd.f32 %v2550_v0, %v6121_v14 }
 0x19c   : > { %v4745_v27 = vpop.f32.mrf.mxu0  ;;  %v4711_v58 = vpop.f32.mrf.mxu1 }
 0x19d   : > { %v6220_v40 = vadd.f32 %v4745_v27, %v2668_v13  ;;  %v2672_v23 = vadd.f32 %v4711_v58, %v6124_v21 }
 0x19e   : > { %v2986_v28 = vpop.f32.mrf.mxu0  ;;  %v2563_v56 = vpop.f32.mrf.mxu1 }
 0x19f   : > { %v6223_v2 = vadd.f32 %v2986_v28, %v2666_v41  ;;  %v2670_v5 = vadd.f32 %v2563_v56, %v6127_v48 }
 0x1a0   : > { %v4746_v8 = vpop.f32.mrf.mxu0  ;;  %v4712_v3 = vpop.f32.mrf.mxu1 }
 0x1a1   : > { %v6226_v51 = vadd.f32 %v4746_v8, %v2669_v31  ;;  %v2673_v47 = vadd.f32 %v4712_v3, %v6130_v16 }
 0x1a2   : > { %v2989_v46 = vpop.f32.mrf.mxu0  ;;  %v2566_v14 = vpop.f32.mrf.mxu1 }
 0x1a3   : > { %v6229_v1 = vadd.f32 %v2989_v46, %v2667_v57  ;;  %v2671_v43 = vadd.f32 %v2566_v14, %v6133_v12 }
 0x1a4   : > { %v4749_v22 = vpop.f32.mrf.mxu0  ;;  %v4715_v21 = vpop.f32.mrf.mxu1 }
 0x1a5   : > { %v6232_v25 = vadd.f32 %v4749_v22, %v2672_v23  ;;  %v2676_v44 = vadd.f32 %v4715_v21, %v6136_v4 }
 0x1a6   : > { %v3002_v18 = vpop.f32.mrf.mxu0  ;;  %v2579_v48 = vpop.f32.mrf.mxu1 }
 0x1a7   : > { %v6235_v33 = vadd.f32 %v3002_v18, %v2670_v5  ;;  %v2674_v55 = vadd.f32 %v2579_v48, %v6139_v37 }
 0x1a8   : > { %v4750_v13 = vpop.f32.mrf.mxu0  ;;  %v4716_v16 = vpop.f32.mrf.mxu1 }
 0x1a9   : > { %v6238_v29 = vadd.f32 %v4750_v13, %v2673_v47  ;;  %v2677_v30 = vadd.f32 %v4716_v16, %v6142_v20 }
 0x1aa   : > { %v3005_v41 = vpop.f32.mrf.mxu0  ;;  %v2582_v12 = vpop.f32.mrf.mxu1 }
 0x1ab   : > { %v6241_v50 = vadd.f32 %v3005_v41, %v2671_v43  ;;  %v2675_v9 = vadd.f32 %v2582_v12, %v6145_v15 }
 0x1ac   : > { %v4753_v31 = vpop.f32.mrf.mxu0  ;;  %v4719_v4 = vpop.f32.mrf.mxu1 }
 0x1ad   : > { %v6244_v19 = vadd.f32 %v4753_v31, %v2676_v44  ;;  %v2680_v0 = vadd.f32 %v4719_v4, %v6148_v35 }
 0x1ae   : > { %v3018_v57 = vpop.f32.mrf.mxu0  ;;  %v2595_v37 = vpop.f32.mrf.mxu1 }
 0x1af   : > { %v6247_v27 = vadd.f32 %v3018_v57, %v2674_v55  ;;  %v2678_v58 = vadd.f32 %v2595_v37, %v6151_v62 }
 0x1b0   : > { %v4754_v23 = vpop.f32.mrf.mxu0  ;;  %v4720_v20 = vpop.f32.mrf.mxu1 }
 0x1b1   : > { %v6250_v28 = vadd.f32 %v4754_v23, %v2677_v30  ;;  %v2681_v56 = vadd.f32 %v4720_v20, %v6154_v11 }
 0x1b2   : > { %v3021_v5 = vpop.f32.mrf.mxu0  ;;  %v2598_v15 = vpop.f32.mrf.mxu1 }
 0x1b3   : > { %v6253_v8 = vadd.f32 %v3021_v5, %v2675_v9  ;;  %v2679_v3 = vadd.f32 %v2598_v15, %v6157_v42 }
 0x1b4   : > { %v4757_v47 = vpop.f32.mrf.mxu0  ;;  %v4723_v35 = vpop.f32.mrf.mxu1 }
 0x1b5   : > { %v6256_v46 = vadd.f32 %v4757_v47, %v2680_v0  ;;  %v2684_v14 = vadd.f32 %v4723_v35, %v6160_v36 }
 0x1b6   : > { %v3034_v43 = vpop.f32.mrf.mxu0  ;;  %v2611_v62 = vpop.f32.mrf.mxu1 }
 0x1b7   : > { %v6259_v22 = vadd.f32 %v3034_v43, %v2678_v58  ;;  %v2682_v21 = vadd.f32 %v2611_v62, %v6163_v59 }
 0x1b8   : > { %v4758_v44 = vpop.f32.mrf.mxu0  ;;  %v4724_v11 = vpop.f32.mrf.mxu1 }
 0x1b9   : > { %v6262_v18 = vadd.f32 %v4758_v44, %v2681_v56  ;;  %v2685_v48 = vadd.f32 %v4724_v11, %v6166_v63 }
 0x1ba   : > { %v3037_v55 = vpop.f32.mrf.mxu0  ;;  %v2614_v42 = vpop.f32.mrf.mxu1 }
 0x1bb   : > { %v6265_v13 = vadd.f32 %v3037_v55, %v2679_v3  ;;  %v2683_v16 = vadd.f32 %v2614_v42, %v6169_v24 }
 0x1bc   : > { %v4761_v30 = vpop.f32.mrf.mxu0  ;;  %v4727_v36 = vpop.f32.mrf.mxu1 }
 0x1bd   : > { %v6268_v41 = vadd.f32 %v4761_v30, %v2684_v14  ;;  %v2688_v12 = vadd.f32 %v4727_v36, %v6172_v61 }
 0x1be   : > { %v3050_v9 = vpop.f32.mrf.mxu0  ;;  %v2627_v59 = vpop.f32.mrf.mxu1 }
 0x1bf   : > { %v6271_v31 = vadd.f32 %v3050_v9, %v2682_v21  ;;  %v2686_v4 = vadd.f32 %v2627_v59, %v6175_v10 }
 0x1c0   : > { %v4762_v0 = vpop.f32.mrf.mxu0  ;;  %v4728_v63 = vpop.f32.mrf.mxu1 }
 0x1c1   : > { %v6274_v57 = vadd.f32 %v4762_v0, %v2685_v48  ;;  %v2689_v37 = vadd.f32 %v4728_v63, %v6178_v45 }
 0x1c2   : > { %v3053_v58 = vpop.f32.mrf.mxu0  ;;  %v2630_v24 = vpop.f32.mrf.mxu1 }
 0x1c3   : > { %v6277_v23 = vadd.f32 %v3053_v58, %v2683_v16  ;;  %v2687_v20 = vadd.f32 %v2630_v24, %v6181_v32 }
 0x1c4   : > { %v4765_v56 = vpop.f32.mrf.mxu0  ;;  %v4731_v61 = vpop.f32.mrf.mxu1 }
 0x1c5   : > { %v6280_v5 = vadd.f32 %v4765_v56, %v2688_v12  ;;  %v2692_v15 = vadd.f32 %v4731_v61, %v6184_v49 }
 0x1c6   : > { %v3066_v3 = vpop.f32.mrf.mxu0  ;;  %v2643_v10 = vpop.f32.mrf.mxu1 }
 0x1c7   : > { %v6283_v47 = vadd.f32 %v3066_v3, %v2686_v4  ;;  %v2690_v35 = vadd.f32 %v2643_v10, %v6187_v54 }
 0x1c8   : > { %v4766_v14 = vpop.f32.mrf.mxu0  ;;  %v4732_v45 = vpop.f32.mrf.mxu1 }
 0x1c9   : > { %v6286_v43 = vadd.f32 %v4766_v14, %v2689_v37  ;;  %v2693_v62 = vadd.f32 %v4732_v45, %v6190_v6 }
 0x1ca   : > { %v3069_v32 = vpop.f32.mrf.mxu0  ;;  %v2646_v21 = vpop.f32.mrf.mxu1 }
 0x1cb   : > { %v6289_v44 = vadd.f32 %v3069_v32, %v2687_v20  ;;  %v2691_v11 = vadd.f32 %v2646_v21, %v6193_v39 }
 0x1cc   : > { %v4769_v49 = vpop.f32.mrf.mxu0  ;;  %v4775_v55 = vpop.f32.mrf.mxu1 }
 0x1cd   : > { %v6292_v48 = vadd.f32 %v4769_v49, %v2692_v15  ;;  %v3546_v6 = vadd.f32 %v4775_v55, %v6196_v34 }
 0x1ce   : > { %v3082_v42 = vpop.f32.mrf.mxu0  ;;  %v3401_v54 = vpop.f32.mrf.mxu1 }
 0x1cf   : > { %v6294_v16 = vadd.f32 %v3082_v42, %v2690_v35  ;;  %v3544_v0 = vadd.f32 %v3401_v54, %v6199_v52 }
 0x1d0   : > { %v4770_v30 = vpop.f32.mrf.mxu0  ;;  %v4776_v12 = vpop.f32.mrf.mxu1 }
 0x1d1   : > { %v6296_v36 = vadd.f32 %v4770_v30, %v2693_v62  ;;  %v3547_v24 = vadd.f32 %v4776_v12, %v6202_v53 }
 0x1d2   : > { %v3085_v9 = vpop.f32.mrf.mxu0  ;;  %v3404_v4 = vpop.f32.mrf.mxu1 }
 0x1d3   : > { %v6300_v59 = vadd.f32 %v3085_v9, %v2691_v11  ;;  %v3545_v52 = vadd.f32 %v3404_v4, %v6205_v38 }
 0x1d4   : > { %v4813_v39 = vpop.f32.mrf.mxu0  ;;  %v4779_v63 = vpop.f32.mrf.mxu1 }
 0x1d5   : > { %v3860_v37 = vadd.f32 %v4813_v39, %v3546_v6  ;;  %v3550_v14 = vadd.f32 %v4779_v63, %v6208_v17 }
 0x1d6   : > { %v3715_v58 = vpop.f32.mrf.mxu0  ;;  %v3417_v20 = vpop.f32.mrf.mxu1 }
 0x1d7   : > { %v3896_v34 = vmax.f32 %v3860_v37, 0.0  ;;  %v3858_v56 = vadd.f32 %v3715_v58, %v3544_v0  ;;  %v3548_v21 = vadd.f32 %v3417_v20, %v6211_v7 }
 0x1d8   : > { %v4814_v61 = vpop.f32.mrf.mxu0  ;;  %v4780_v3 = vpop.f32.mrf.mxu1 }
 0x1d9   : > { %3933 = vst.msk [vmem:[%s6306_s20 + $0x10] sm:$0xff] %vm3930_vm8, %v3896_v34  ;;  %v3894_v15 = vmax.f32 %v3858_v56, 0.0  ;;  %v3861_v10 = vadd.f32 %v4814_v61, %v3547_v24  ;;  %v3551_v42 = vadd.f32 %v4780_v3, %v6214_v60 }
 0x1da   : > { %v3718_v35 = vpop.f32.mrf.mxu0  ;;  %v3420_v53 = vpop.f32.mrf.mxu1 }
 0x1db   : > { %3931 = vst.msk [vmem:[%s6306_s20] sm:$0xff] %vm3930_vm8, %v3894_v15  ;;  %v3897_v45 = vmax.f32 %v3861_v10, 0.0  ;;  %v3859_v62 = vadd.f32 %v3718_v35, %v3545_v52  ;;  %v3549_v9 = vadd.f32 %v3420_v53, %v6217_v26 }
 0x1dc   : > { %v4817_v32 = vpop.f32.mrf.mxu0  ;;  %v4783_v11 = vpop.f32.mrf.mxu1 }
 0x1dd   : > { %3934 = vst.msk [vmem:[%s6306_s20 + $0x18] sm:$0xff] %vm3930_vm8, %v3897_v45  ;;  %v3895_v38 = vmax.f32 %v3859_v62, 0.0  ;;  %v3864_v49 = vadd.f32 %v4817_v32, %v3550_v14  ;;  %v3554_v0 = vadd.f32 %v4783_v11, %v6220_v40 }
 0x1de   : > { %v3731_v55 = vpop.f32.mrf.mxu0  ;;  %v3433_v54 = vpop.f32.mrf.mxu1 }
 0x1df   : > { %3932 = vst.msk [vmem:[%s6306_s20 + $0x8] sm:$0xff] %vm3930_vm8, %v3895_v38  ;;  %v3900_v17 = vmax.f32 %v3864_v49, 0.0  ;;  %v3862_v30 = vadd.f32 %v3731_v55, %v3548_v21  ;;  %v3552_v24 = vadd.f32 %v3433_v54, %v6223_v2 }
 0x1e0   : > { %v4818_v12 = vpop.f32.mrf.mxu0  ;;  %v4784_v6 = vpop.f32.mrf.mxu1 }
 0x1e1   : > { %3937 = vst.msk [vmem:[%s6306_s20 + $0x30] sm:$0xff] %vm3930_vm8, %v3900_v17  ;;  %v3898_v7 = vmax.f32 %v3862_v30, 0.0  ;;  %v3865_v4 = vadd.f32 %v4818_v12, %v3551_v42  ;;  %v3555_v61 = vadd.f32 %v4784_v6, %v6226_v51 }
 0x1e2   : > { %v3734_v39 = vpop.f32.mrf.mxu0  ;;  %v3436_v63 = vpop.f32.mrf.mxu1 }
 0x1e3   : > { %3935 = vst.msk [vmem:[%s6306_s20 + $0x20] sm:$0xff] %vm3930_vm8, %v3898_v7  ;;  %v3901_v60 = vmax.f32 %v3865_v4, 0.0  ;;  %v3863_v37 = vadd.f32 %v3734_v39, %v3549_v9  ;;  %v3553_v10 = vadd.f32 %v3436_v63, %v6229_v1 }
 0x1e4   : > { %v4821_v58 = vpop.f32.mrf.mxu0  ;;  %v4787_v34 = vpop.f32.mrf.mxu1 }
 0x1e5   : > { %3938 = vst.msk [vmem:[%s6306_s20 + $0x38] sm:$0xff] %vm3930_vm8, %v3901_v60  ;;  %v3899_v26 = vmax.f32 %v3863_v37, 0.0  ;;  %v3868_v20 = vadd.f32 %v4821_v58, %v3554_v0  ;;  %v3558_v53 = vadd.f32 %v4787_v34, %v6232_v25 }
 0x1e6   : > { %v3747_v56 = vpop.f32.mrf.mxu0  ;;  %v3449_v52 = vpop.f32.mrf.mxu1 }
 0x1e7   : > { %3936 = vst.msk [vmem:[%s6306_s20 + $0x28] sm:$0xff] %vm3930_vm8, %v3899_v26  ;;  %v3904_v40 = vmax.f32 %v3868_v20, 0.0  ;;  %v3866_v15 = vadd.f32 %v3747_v56, %v3552_v24  ;;  %v3556_v38 = vadd.f32 %v3449_v52, %v6235_v33 }
 0x1e8   : > { %v4822_v3 = vpop.f32.mrf.mxu0  ;;  %v4788_v35 = vpop.f32.mrf.mxu1 }
 0x1e9   : > { %3941 = vst.msk [vmem:[%s6306_s20 + $0x50] sm:$0xff] %vm3930_vm8, %v3904_v40  ;;  %v3902_v2 = vmax.f32 %v3866_v15, 0.0  ;;  %v3869_v14 = vadd.f32 %v4822_v3, %v3555_v61  ;;  %v3559_v42 = vadd.f32 %v4788_v35, %v6238_v29 }
 0x1ea   : > { %v3750_v45 = vpop.f32.mrf.mxu0  ;;  %v3452_v62 = vpop.f32.mrf.mxu1 }
 0x1eb   : > { %3939 = vst.msk [vmem:[%s6306_s20 + $0x40] sm:$0xff] %vm3930_vm8, %v3902_v2  ;;  %v3905_v51 = vmax.f32 %v3869_v14, 0.0  ;;  %v3867_v32 = vadd.f32 %v3750_v45, %v3553_v10  ;;  %v3557_v12 = vadd.f32 %v3452_v62, %v6241_v50 }
 0x1ec   : > { %v4825_v21 = vpop.f32.mrf.mxu0  ;;  %v4791_v11 = vpop.f32.mrf.mxu1 }
 0x1ed   : > { %3942 = vst.msk [vmem:[%s6306_s20 + $0x58] sm:$0xff] %vm3930_vm8, %v3905_v51  ;;  %v3903_v1 = vmax.f32 %v3867_v32, 0.0  ;;  %v3872_v49 = vadd.f32 %v4825_v21, %v3558_v53  ;;  %v3562_v4 = vadd.f32 %v4791_v11, %v6244_v19 }
 0x1ee   : > { %v3763_v55 = vpop.f32.mrf.mxu0  ;;  %v3465_v17 = vpop.f32.mrf.mxu1 }
 0x1ef   : > { %3940 = vst.msk [vmem:[%s6306_s20 + $0x48] sm:$0xff] %vm3930_vm8, %v3903_v1  ;;  %v3908_v25 = vmax.f32 %v3872_v49, 0.0  ;;  %v3870_v54 = vadd.f32 %v3763_v55, %v3556_v38  ;;  %v3560_v63 = vadd.f32 %v3465_v17, %v6247_v27 }
 0x1f0   : > { %v4826_v30 = vpop.f32.mrf.mxu0  ;;  %v4792_v9 = vpop.f32.mrf.mxu1 }
 0x1f1   : > { %3945 = vst.msk [vmem:[%s6306_s20 + $0x70] sm:$0xff] %vm3930_vm8, %v3908_v25  ;;  %v3906_v33 = vmax.f32 %v3870_v54, 0.0  ;;  %v3873_v7 = vadd.f32 %v4826_v30, %v3559_v42  ;;  %v3563_v26 = vadd.f32 %v4792_v9, %v6250_v28 }
 0x1f2   : > { %v3766_v6 = vpop.f32.mrf.mxu0  ;;  %v3468_v39 = vpop.f32.mrf.mxu1 }
 0x1f3   : > { %3943 = vst.msk [vmem:[%s6306_s20 + $0x60] sm:$0xff] %vm3930_vm8, %v3906_v33  ;;  %v3909_v29 = vmax.f32 %v3873_v7, 0.0  ;;  %v3871_v0 = vadd.f32 %v3766_v6, %v3557_v12  ;;  %v3561_v61 = vadd.f32 %v3468_v39, %v6253_v8 }
 0x1f4   : > { %v4829_v60 = vpop.f32.mrf.mxu0  ;;  %v4795_v37 = vpop.f32.mrf.mxu1 }
 0x1f5   : > { %3946 = vst.msk [vmem:[%s6306_s20 + $0x78] sm:$0xff] %vm3930_vm8, %v3909_v29  ;;  %v3907_v50 = vmax.f32 %v3871_v0, 0.0  ;;  %v3876_v58 = vadd.f32 %v4829_v60, %v3562_v4  ;;  %v3566_v3 = vadd.f32 %v4795_v37, %v6256_v46 }
 0x1f6   : > { %v3779_v24 = vpop.f32.mrf.mxu0  ;;  %v3481_v34 = vpop.f32.mrf.mxu1 }
 0x1f7   : > { %3944 = vst.msk [vmem:[%s6306_s20 + $0x68] sm:$0xff] %vm3930_vm8, %v3907_v50  ;;  %v3912_v19 = vmax.f32 %v3876_v58, 0.0  ;;  %v3874_v20 = vadd.f32 %v3779_v24, %v3560_v63  ;;  %v3564_v14 = vadd.f32 %v3481_v34, %v6259_v22 }
 0x1f8   : > { %v4830_v56 = vpop.f32.mrf.mxu0  ;;  %v4796_v40 = vpop.f32.mrf.mxu1 }
 0x1f9   : > { %3949 = vst.msk [vmem:[%s6306_s20 + $0x90] sm:$0xff] %vm3930_vm8, %v3912_v19  ;;  %v3910_v27 = vmax.f32 %v3874_v20, 0.0  ;;  %v3877_v52 = vadd.f32 %v4830_v56, %v3563_v26  ;;  %v3567_v62 = vadd.f32 %v4796_v40, %v6262_v18 }
 0x1fa   : > { %v3782_v15 = vpop.f32.mrf.mxu0  ;;  %v3484_v10 = vpop.f32.mrf.mxu1 }
 0x1fb   : > { %3947 = vst.msk [vmem:[%s6306_s20 + $0x80] sm:$0xff] %vm3930_vm8, %v3910_v27  ;;  %v3913_v28 = vmax.f32 %v3877_v52, 0.0  ;;  %v3875_v2 = vadd.f32 %v3782_v15, %v3561_v61  ;;  %v3565_v1 = vadd.f32 %v3484_v10, %v6265_v13 }
 0x1fc   : > { %v4833_v35 = vpop.f32.mrf.mxu0  ;;  %v4799_v45 = vpop.f32.mrf.mxu1 }
 0x1fd   : > { %3950 = vst.msk [vmem:[%s6306_s20 + $0x98] sm:$0xff] %vm3930_vm8, %v3913_v28  ;;  %v3911_v8 = vmax.f32 %v3875_v2, 0.0  ;;  %v3880_v53 = vadd.f32 %v4833_v35, %v3566_v3  ;;  %v3570_v42 = vadd.f32 %v4799_v45, %v6268_v41 }
 0x1fe   : > { %v3795_v51 = vpop.f32.mrf.mxu0  ;;  %v3497_v32 = vpop.f32.mrf.mxu1 }
 0x1ff   : > { %3948 = vst.msk [vmem:[%s6306_s20 + $0x88] sm:$0xff] %vm3930_vm8, %v3911_v8  ;;  %v3916_v46 = vmax.f32 %v3880_v53, 0.0  ;;  %v3878_v21 = vadd.f32 %v3795_v51, %v3564_v14  ;;  %v3568_v30 = vadd.f32 %v3497_v32, %v6271_v31 }
 0x200   : > { %v4834_v38 = vpop.f32.mrf.mxu0  ;;  %v4800_v11 = vpop.f32.mrf.mxu1 }
 0x201   : > { %3953 = vst.msk [vmem:[%s6306_s20 + $0xb0] sm:$0xff] %vm3930_vm8, %v3916_v46  ;;  %v3914_v22 = vmax.f32 %v3878_v21, 0.0  ;;  %v3881_v49 = vadd.f32 %v4834_v38, %v3567_v62  ;;  %v3571_v7 = vadd.f32 %v4800_v11, %v6274_v57 }
 0x202   : > { %v3798_v55 = vpop.f32.mrf.mxu0  ;;  %v3500_v25 = vpop.f32.mrf.mxu1 }
 0x203   : > { %3951 = vst.msk [vmem:[%s6306_s20 + $0xa0] sm:$0xff] %vm3930_vm8, %v3914_v22  ;;  %v3917_v18 = vmax.f32 %v3881_v49, 0.0  ;;  %v3879_v17 = vadd.f32 %v3798_v55, %v3565_v1  ;;  %v3569_v39 = vadd.f32 %v3500_v25, %v6277_v23 }
 0x204   : > { %v4837_v54 = vpop.f32.mrf.mxu0  ;;  %v4803_v12 = vpop.f32.mrf.mxu1 }
 0x205   : > { %3954 = vst.msk [vmem:[%s6306_s20 + $0xb8] sm:$0xff] %vm3930_vm8, %v3917_v18  ;;  %v3915_v13 = vmax.f32 %v3879_v17, 0.0  ;;  %v3884_v33 = vadd.f32 %v4837_v54, %v3570_v42  ;;  %v3574_v50 = vadd.f32 %v4803_v12, %v6280_v5 }
 0x206   : > { %v3811_v9 = vpop.f32.mrf.mxu0  ;;  %v3513_v6 = vpop.f32.mrf.mxu1 }
 0x207   : > { %3952 = vst.msk [vmem:[%s6306_s20 + $0xa8] sm:$0xff] %vm3930_vm8, %v3915_v13  ;;  %v3920_v41 = vmax.f32 %v3884_v33, 0.0  ;;  %v3882_v4 = vadd.f32 %v3811_v9, %v3568_v30  ;;  %v3572_v26 = vadd.f32 %v3513_v6, %v6283_v47 }
 0x208   : > { %v4838_v29 = vpop.f32.mrf.mxu0  ;;  %v4804_v0 = vpop.f32.mrf.mxu1 }
 0x209   : > { %3957 = vst.msk [vmem:[%s6306_s20 + $0xd0] sm:$0xff] %vm3930_vm8, %v3920_v41  ;;  %v3918_v31 = vmax.f32 %v3882_v4, 0.0  ;;  %v3885_v60 = vadd.f32 %v4838_v29, %v3571_v7  ;;  %v3575_v56 = vadd.f32 %v4804_v0, %v6286_v43 }
 0x20a   : > { %v3814_v63 = vpop.f32.mrf.mxu0  ;;  %v3516_v37 = vpop.f32.mrf.mxu1 }
 0x20b   : > { %3955 = vst.msk [vmem:[%s6306_s20 + $0xc0] sm:$0xff] %vm3930_vm8, %v3918_v31  ;;  %v3921_v57 = vmax.f32 %v3885_v60, 0.0  ;;  %v3883_v58 = vadd.f32 %v3814_v63, %v3569_v39  ;;  %v3573_v52 = vadd.f32 %v3516_v37, %v6289_v44 }
 0x20c   : > { %v4841_v24 = vpop.f32.mrf.mxu0  ;;  %v4807_v19 = vpop.f32.mrf.mxu1 }
 0x20d   : > { %3958 = vst.msk [vmem:[%s6306_s20 + $0xd8] sm:$0xff] %vm3930_vm8, %v3921_v57  ;;  %v3919_v23 = vmax.f32 %v3883_v58, 0.0  ;;  %v3888_v34 = vadd.f32 %v4841_v24, %v3574_v50  ;;  %v3578_v10 = vadd.f32 %v4807_v19, %v6292_v48 }
 0x20e   : > { %v3827_v20 = vpop.f32.mrf.mxu0  ;;  %v3529_v61 = vpop.f32.mrf.mxu1 }
 0x20f   : > { %3956 = vst.msk [vmem:[%s6306_s20 + $0xc8] sm:$0xff] %vm3930_vm8, %v3919_v23  ;;  %v3924_v5 = vmax.f32 %v3888_v34, 0.0  ;;  %v3886_v27 = vadd.f32 %v3827_v20, %v3572_v26  ;;  %v3576_v14 = vadd.f32 %v3529_v61, %v6294_v16 }
 0x210   : > { %v4842_v40 = vpop.f32.mrf.mxu0  ;;  %v4808_v3 = vpop.f32.mrf.mxu1 }
 0x211   : > { %3961 = vst.msk [vmem:[%s6306_s20 + $0xf0] sm:$0xff] %vm3930_vm8, %v3924_v5  ;;  %v3922_v47 = vmax.f32 %v3886_v27, 0.0  ;;  %v3889_v15 = vadd.f32 %v4842_v40, %v3575_v56  ;;  %v3579_v51 = vadd.f32 %v4808_v3, %v6296_v36 }
 0x212   : > { %v3830_v28 = vpop.f32.mrf.mxu0  ;;  %v3532_v45 = vpop.f32.mrf.mxu1 }
 0x213   : > { %3959 = vst.msk [vmem:[%s6306_s20 + $0xe0] sm:$0xff] %vm3930_vm8, %v3922_v47  ;;  %v3925_v43 = vmax.f32 %v3889_v15, 0.0  ;;  %v3887_v2 = vadd.f32 %v3830_v28, %v3573_v52  ;;  %v3577_v32 = vadd.f32 %v3532_v45, %v6300_v59 }
 0x214   : > { %v4845_v35 = vpop.f32.mrf.mxu0 }
 0x215   : > { %3962 = vst.msk [vmem:[%s6306_s20 + $0xf8] sm:$0xff] %vm3930_vm8, %v3925_v43  ;;  %v3923_v44 = vmax.f32 %v3887_v2, 0.0  ;;  %v3892_v8 = vadd.f32 %v4845_v35, %v3578_v10 }
 0x216   : > { %v3843_v53 = vpop.f32.mrf.mxu0 }
 0x217   : > { %3960 = vst.msk [vmem:[%s6306_s20 + $0xe8] sm:$0xff] %vm3930_vm8, %v3923_v44  ;;  %v3928_v48 = vmax.f32 %v3892_v8, 0.0  ;;  %v3890_v62 = vadd.f32 %v3843_v53, %v3576_v14 }
 0x218   : > { %v4846_v46 = vpop.f32.mrf.mxu0 }
 0x219   : > { %3965 = vst.msk [vmem:[%s6306_s20 + $0x110] sm:$0xff] %vm3930_vm8, %v3928_v48  ;;  %v3926_v16 = vmax.f32 %v3890_v62, 0.0  ;;  %v3893_v21 = vadd.f32 %v4846_v46, %v3579_v51 }
 0x21a   : > { %v3846_v38 = vpop.f32.mrf.mxu0 }
 0x21b   : > { %3963 = vst.msk [vmem:[%s6306_s20 + $0x100] sm:$0xff] %vm3930_vm8, %v3926_v16  ;;  %v3929_v1 = vmax.f32 %v3893_v21, 0.0  ;;  %v3891_v22 = vadd.f32 %v3846_v38, %v3577_v32 }
 0x21d   : > { %3966 = vst.msk [vmem:[%s6306_s20 + $0x118] sm:$0xff] %vm3930_vm8, %v3929_v1  ;;  %v3927_v11 = vmax.f32 %v3891_v22, 0.0 }
 0x21f   : > { %3964 = vst.msk [vmem:[%s6306_s20 + $0x108] sm:$0xff] %vm3930_vm8, %v3927_v11 }
 0x220 PF: > { %s13_s14 = sadd.s32 1, %s4987_s14   ;;  %s6481_s12 = smov %s4983_s13 }
 0x221   : > { %p10_p5 = scmp.ge.s32.totalorder %s13_s14, 4   ;;  %s6482_s13 = smov %s6484_s15 }
 0x223   :  { %12 = sbr.rel (!%p10_p5) target bundleno = 2 (0x2), region = 76 }

</bundles_post_ra>
